<compile_context>
chip_gen: v7x
topology: tpu7x:2x2x1
jax: 0.10.0
libtpu: 0.0.40
codegen_flags: <defaults>
</compile_context>

<pallas_src>
import functools

import jax
import jax.numpy as jnp
import numpy as np
from jax.experimental import pallas as pl
from jax.experimental.pallas import tpu as pltpu


def _round_up(x, m):
    return (x + m - 1) // m * m


def _vmem_capacity_bytes():
    try:
        return int(pltpu.get_tpu_info().vmem_capacity_bytes)
    except Exception:
        return 128 * 1024 * 1024


def _num_batch_shards(batch):
    """2 batch shards on v7x-class chips (2 TensorCores per chip) when the
    padded batch can be split into two >=8-row shards; 1 otherwise."""
    if batch < 16:
        return 1
    try:
        kind = jax.devices()[0].device_kind.lower()
    except Exception:
        return 1
    if "v7" in kind or "7x" in kind:
        return 2
    return 1


def _encoder_lstm_kernel(emb_ref, bias_ref, wih_hbm, whh_hbm,
                         out_ref, cn_ref,
                         wih_sc, whh_sc, xg_sc, h_sc, c_sc, *,
                         seq_len, t_blk, hp, bp, e, mm_dtype,
                         need_mask, unroll):
    """Fused LSTM encoder block.

    grid = (batch_shard [parallel], time_block [arbitrary]).
    Per invocation: one block-wide input projection (off the serial path),
    then the sequential recurrence  gates = x_proj[t] + h_{t-1} @ W_hh^T
    (bias folded into the projection).  Gate order matches PyTorch: i,f,g,o.
    """
    tb = pl.program_id(1)

    @pl.when(tb == 0)
    def _():
        # Resident, single-buffered weights: copied once per batch shard
        # (i.e. once per TensorCore when the parallel axis is core-split).
        pltpu.sync_copy(wih_hbm, wih_sc)
        pltpu.sync_copy(whh_hbm, whh_sc)
        # h0 = c0 = 0  (EncoderRNN.init_weights)
        h_sc[...] = jnp.zeros_like(h_sc)
        c_sc[...] = jnp.zeros_like(c_sc)

    # ---- block-wide input projection: one big MXU matmul (M = t_blk*bp) ----
    emb2d = emb_ref[...].reshape(t_blk * bp, e).astype(mm_dtype)
    xg_sc[...] = (jnp.dot(emb2d, wih_sc[...],
                          preferred_element_type=jnp.float32)
                  + bias_ref[...])

    whh = whh_sc[...]                    # stays VMEM-resident across the loop

    def step(s, carry):
        h_prev, c_prev = carry           # f32 (bp, hp)
        row = pl.multiple_of(s * bp, bp)
        xg = xg_sc[pl.ds(row, bp), :]    # f32 (bp, 4hp), bias included
        gates = xg + jnp.dot(h_prev.astype(mm_dtype), whh,
                             preferred_element_type=jnp.float32)

        if_g = jax.nn.sigmoid(gates[:, 0:2 * hp])      # fused i|f sigmoid slab
        i_g = if_g[:, 0:hp]
        f_g = if_g[:, hp:2 * hp]
        g_g = jnp.tanh(gates[:, 2 * hp:3 * hp])
        o_g = jax.nn.sigmoid(gates[:, 3 * hp:4 * hp])

        c_new = f_g * c_prev + i_g * g_g
        h_new = o_g * jnp.tanh(c_new)

        if need_mask:                    # only the last (partial) time block
            valid = (tb * t_blk + s) < seq_len
            h_new = jnp.where(valid, h_new, h_prev)
            c_new = jnp.where(valid, c_new, c_prev)

        out_ref[s] = h_new.astype(out_ref.dtype)
        return h_new, c_new

    h_f, c_f = jax.lax.fori_loop(0, t_blk, step, (h_sc[...], c_sc[...]),
                                 unroll=unroll)
    h_sc[...] = h_f
    c_sc[...] = c_f

    @pl.when(tb == pl.num_programs(1) - 1)
    def _():
        cn_ref[...] = c_f.astype(cn_ref.dtype)


def encoder_rnn_forward(inp_emb, w_ih, w_hh, b_ih, b_hh,
                        *, matmul_dtype=jnp.bfloat16, time_block=None):
    """inp_emb: (T,B,E); w_ih: (4H,E); w_hh: (4H,H); biases: (4H,).
    Returns (outputs (T,B,H), (h_n (1,B,H), c_n (1,B,H)))."""
    T, B, E = inp_emb.shape
    H = w_hh.shape[1]
    mm_dtype = jnp.dtype(matmul_dtype)
    f32b = 4
    mmb = mm_dtype.itemsize

    # embedding_dropout: p = emb_drop = 0.0 (module default / eval) -> identity.
    embedded = inp_emb

    n_bshard = _num_batch_shards(B)
    Bp = _round_up(B, 8 * n_bshard)           # sublane-aligned, shardable batch
    Bps = Bp // n_bshard                       # per-shard batch rows
    Hp = _round_up(H, 128)                     # per-gate lane padding (see header)

    # ---- generation-aware VMEM budget -> time-block size --------------------
    cap = _vmem_capacity_bytes()
    small_vmem = cap <= 96 * 1024 * 1024       # v7x-class (64 MiB VMEM)
    budget = (48 if small_vmem else 80) * 1024 * 1024
    limit_cap = (56 if small_vmem else 100) * 1024 * 1024

    fixed = (E * 4 * Hp * mmb                  # resident W_ih^T scratch
             + Hp * 4 * Hp * mmb               # resident W_hh^T scratch
             + 2 * 8 * 4 * Hp * f32b           # bias block (dbl-buffered, padded)
             + 2 * Bps * Hp * f32b             # c_n block (dbl-buffered)
             + 2 * Bps * Hp * f32b)            # h/c scratch
    per_t = (2 * Bps * E * mmb                 # embedded block (dbl-buffered)
             + 2 * Bps * Hp * f32b             # outputs block (dbl-buffered)
             + Bps * 4 * Hp * f32b)            # block x-projection scratch
    t_fit = max(1, (budget - fixed) // per_t)
    t_cap = time_block if time_block is not None else 64
    T_BLK = int(max(1, min(T, t_fit, t_cap)))
    n_blk = pl.cdiv(T, T_BLK)
    Tp = n_blk * T_BLK

    need = fixed + T_BLK * per_t
    vmem_limit = int(min(limit_cap,
                         max(32 * 1024 * 1024, need + 8 * 1024 * 1024)))

    # Partial unroll once the per-step gate slab is large (vreg pressure /
    # code size); full unroll only for small problems.
    unroll = T_BLK if (Bps * 4 * Hp <= 16384 and T_BLK <= 32) else min(8, T_BLK)

    # ---- gate-blocked, lane-padded weight repack (PyTorch order i,f,g,o) ----
    wih_g = w_ih.reshape(4, H, E)
    whh_g = w_hh.reshape(4, H, H)
    bias_g = (b_ih + b_hh).reshape(4, H)

    wih_p = jnp.zeros((4, Hp, E), jnp.float32).at[:, :H, :].set(wih_g)
    whh_p = jnp.zeros((4, Hp, Hp), jnp.float32).at[:, :H, :H].set(whh_g)
    bias_p = jnp.zeros((4, Hp), jnp.float32).at[:, :H].set(bias_g)

    wih_t = wih_p.transpose(2, 0, 1).reshape(E, 4 * Hp).astype(mm_dtype)
    whh_t = whh_p.transpose(2, 0, 1).reshape(Hp, 4 * Hp).astype(mm_dtype)
    bias_f = bias_p.reshape(1, 4 * Hp)                       # f32

    # ---- pad the cheap E-wide input (never a projected activation) ----------
    emb_p = jnp.pad(embedded.astype(mm_dtype),
                    ((0, Tp - T), (0, Bp - B), (0, 0)))

    kernel = functools.partial(
        _encoder_lstm_kernel,
        seq_len=T, t_blk=T_BLK, hp=Hp, bp=Bps, e=E,
        mm_dtype=mm_dtype, need_mask=(Tp != T), unroll=unroll)

    outs_p, c_n_p = pl.pallas_call(
        kernel,
        out_shape=(
            jax.ShapeDtypeStruct((Tp, Bp, Hp), jnp.float32),
            jax.ShapeDtypeStruct((Bp, Hp), jnp.float32),
        ),
        grid_spec=pltpu.PrefetchScalarGridSpec(
            num_scalar_prefetch=0,
            grid=(n_bshard, n_blk),
            in_specs=[
                pl.BlockSpec((T_BLK, Bps, E), lambda bs, tb: (tb, bs, 0)),
                pl.BlockSpec((1, 4 * Hp), lambda bs, tb: (0, 0)),
                pl.BlockSpec(memory_space=pl.ANY),   # W_ih^T -> resident VMEM
                pl.BlockSpec(memory_space=pl.ANY),   # W_hh^T -> resident VMEM
            ],
            out_specs=[
                pl.BlockSpec((T_BLK, Bps, Hp), lambda bs, tb: (tb, bs, 0)),
                pl.BlockSpec((Bps, Hp), lambda bs, tb: (bs, 0)),
            ],
            scratch_shapes=[
                pltpu.VMEM((E, 4 * Hp), mm_dtype),               # W_ih^T
                pltpu.VMEM((Hp, 4 * Hp), mm_dtype),              # W_hh^T
                pltpu.VMEM((T_BLK * Bps, 4 * Hp), jnp.float32),  # block x-proj
                pltpu.VMEM((Bps, Hp), jnp.float32),              # h_t
                pltpu.VMEM((Bps, Hp), jnp.float32),              # c_t
            ],
        ),
        compiler_params=pltpu.CompilerParams(
            dimension_semantics=("parallel", "arbitrary"),
            vmem_limit_bytes=vmem_limit),
    )(emb_p, bias_f, wih_t, whh_t)

    outputs = outs_p[:T, :B, :H].astype(inp_emb.dtype)
    h_n = outputs[-1:]                                  # (1, B, H) == last h
    c_n = c_n_p[:B, :H].astype(inp_emb.dtype)[None]     # (1, B, H)

    # TODO(synk): pack_padded_sequence / pad_packed_sequence (input_lengths
    # branch) has no Pallas equivalent; the unpacked-path semantics are used.
    return outputs, (h_n, c_n)


def _lstm_reference(inp_emb, w_ih, w_hh, b_ih, b_hh):
    """Pure-JAX reference (lax.scan) matching torch.nn.LSTM semantics."""
    T, B, E = inp_emb.shape
    H = w_hh.shape[1]
    bias = b_ih + b_hh

    def step(carry, x):
        h, c = carry
        gates = x @ w_ih.T + h @ w_hh.T + bias
        i = jax.nn.sigmoid(gates[:, 0 * H:1 * H])
        f = jax.nn.sigmoid(gates[:, 1 * H:2 * H])
        g = jnp.tanh(gates[:, 2 * H:3 * H])
        o = jax.nn.sigmoid(gates[:, 3 * H:4 * H])
        c_new = f * c + i * g
        h_new = o * jnp.tanh(c_new)
        return (h_new, c_new), h_new

    h0 = jnp.zeros((B, H), inp_emb.dtype)
    c0 = jnp.zeros((B, H), inp_emb.dtype)
    (h_n, c_n), outs = jax.lax.scan(step, (h0, c0), inp_emb)
    return outs, (h_n[None], c_n[None])


if __name__ == "__main__":
    # Small shapes consistent with the module's forward.
    T, B, E, H = 8, 8, 32, 32   # seq_len, batch (b_size), emb_size, hidden_size

    key = jax.random.PRNGKey(0)
    k_x, k_wih, k_whh, k_bih, k_bhh = jax.random.split(key, 5)

    # PyTorch LSTM default init: uniform(-1/sqrt(H), 1/sqrt(H)).
    bound = 1.0 / np.sqrt(H)
    inp_emb = jax.random.normal(k_x, (T, B, E), dtype=jnp.float32)
    w_ih = jax.random.uniform(k_wih, (4 * H, E), jnp.float32, -bound, bound)
    w_hh = jax.random.uniform(k_whh, (4 * H, H), jnp.float32, -bound, bound)
    b_ih = jax.random.uniform(k_bih, (4 * H,), jnp.float32, -bound, bound)
    b_hh = jax.random.uniform(k_bhh, (4 * H,), jnp.float32, -bound, bound)

    ref_out, (ref_h, ref_c) = _lstm_reference(inp_emb, w_ih, w_hh, b_ih, b_hh)

    # f32 matmul-operand path: tight parity with the f32 reference.
    out32, (h32, c32) = encoder_rnn_forward(inp_emb, w_ih, w_hh, b_ih, b_hh,
                                            matmul_dtype=jnp.float32)
    jax.block_until_ready((out32, h32, c32))
    assert np.allclose(np.asarray(out32), np.asarray(ref_out), atol=1e-4)
    assert np.allclose(np.asarray(h32), np.asarray(ref_h), atol=1e-4)
    assert np.allclose(np.asarray(c32), np.asarray(ref_c), atol=1e-4)

    # Default bf16 matmul operands (MXU-native), f32 accumulation + element math.
    out16, (h16, c16) = encoder_rnn_forward(inp_emb, w_ih, w_hh, b_ih, b_hh)
    jax.block_until_ready((out16, h16, c16))
    assert np.allclose(np.asarray(out16), np.asarray(ref_out), atol=5e-2)
    assert np.allclose(np.asarray(h16), np.asarray(ref_h), atol=5e-2)
    assert np.allclose(np.asarray(c16), np.asarray(ref_c), atol=5e-2)

    # Longer, non-multiple sequence: exercises the multi-time-block grid and
    # the last-block freeze mask; f32 operands give tight parity.
    T2 = 50
    inp2 = jax.random.normal(jax.random.PRNGKey(1), (T2, B, E), jnp.float32)
    ref2_out, (ref2_h, ref2_c) = _lstm_reference(inp2, w_ih, w_hh, b_ih, b_hh)
    out2, (h2, c2) = encoder_rnn_forward(inp2, w_ih, w_hh, b_ih, b_hh,
                                         matmul_dtype=jnp.float32,
                                         time_block=16)
    jax.block_until_ready((out2, h2, c2))
    assert np.allclose(np.asarray(out2), np.asarray(ref2_out), atol=1e-3)
    assert np.allclose(np.asarray(h2), np.asarray(ref2_h), atol=1e-3)
    assert np.allclose(np.asarray(c2), np.asarray(ref2_c), atol=1e-3)

    # bf16 operands over the long sequence (recurrent-cast drift sanity check).
    out2b, (h2b, c2b) = encoder_rnn_forward(inp2, w_ih, w_hh, b_ih, b_hh,
                                            time_block=16)
    jax.block_until_ready((out2b, h2b, c2b))
    assert np.all(np.isfinite(np.asarray(out2b)))
    assert np.allclose(np.asarray(out2b), np.asarray(ref2_out), atol=2.5e-1)

    print("KERNEL_OK")
</pallas_src>

<mosaic_0001>
module attributes {stable_mosaic.version = 11 : i64} {
  func.func @_encoder_lstm_kernel(%arg0: i32, %arg1: i32, %arg2: memref<8x8x32xf32, #tpu.memory_space<vmem>>, %arg3: memref<1x512xf32, #tpu.memory_space<vmem>>, %arg4: memref<32x512xf32, #tpu.memory_space<any>>, %arg5: memref<128x512xf32, #tpu.memory_space<any>>, %arg6: memref<8x8x128xf32, #tpu.memory_space<vmem>>, %arg7: memref<8x128xf32, #tpu.memory_space<vmem>>, %arg8: memref<32x512xf32, #tpu.memory_space<vmem>>, %arg9: memref<128x512xf32, #tpu.memory_space<vmem>>, %arg10: memref<64x512xf32, #tpu.memory_space<vmem>>, %arg11: memref<8x128xf32, #tpu.memory_space<vmem>>, %arg12: memref<8x128xf32, #tpu.memory_space<vmem>>) attributes {dimension_semantics = [#tpu.dimension_semantics<parallel>, #tpu.dimension_semantics<arbitrary>], iteration_bounds = array<i64: 1, 1>, scalar_prefetch = 0 : i64, scratch_operands = 5 : i64, tpu.core_type = #tpu.core_type<tc>, window_params = [{transform_indices = @transform_0, window_bounds = array<i64: 8, 8, 32>}, {pipeline_mode = #tpu.pipeline_mode<synchronous>, transform_indices = @transform_1, window_bounds = array<i64: 1, 512>}, {}, {}, {transform_indices = @transform_4, window_bounds = array<i64: 8, 8, 128>}, {transform_indices = @transform_5, window_bounds = array<i64: 8, 128>}]} {
    %c0_i32 = arith.constant 0 : i32
    %0 = arith.cmpi eq, %arg1, %c0_i32 : i32
    %1 = arith.extui %0 : i1 to i32
    %c0_i32_0 = arith.constant 0 : i32
    %2 = arith.cmpi ne, %1, %c0_i32_0 : i32
    scf.if %2 {
      "tpu.region"() ({
        %271 = tpu.sem_alloc : memref<!tpu.dma_semaphore, #tpu.memory_space<semaphore_mem>>
        tpu.enqueue_dma source(%arg4 : memref<32x512xf32, #tpu.memory_space<any>>) target(%arg8 : memref<32x512xf32, #tpu.memory_space<vmem>>) target_semaphore(%271 : memref<!tpu.dma_semaphore, #tpu.memory_space<semaphore_mem>>)
        tpu.wait_dma2 semaphore(%271 : memref<!tpu.dma_semaphore, #tpu.memory_space<semaphore_mem>>) src(%arg4 : memref<32x512xf32, #tpu.memory_space<any>>) dst(%arg8 : memref<32x512xf32, #tpu.memory_space<vmem>>)
        tpu.yield
      }) : () -> ()
      "tpu.region"() ({
        %271 = tpu.sem_alloc : memref<!tpu.dma_semaphore, #tpu.memory_space<semaphore_mem>>
        tpu.enqueue_dma source(%arg5 : memref<128x512xf32, #tpu.memory_space<any>>) target(%arg9 : memref<128x512xf32, #tpu.memory_space<vmem>>) target_semaphore(%271 : memref<!tpu.dma_semaphore, #tpu.memory_space<semaphore_mem>>)
        tpu.wait_dma2 semaphore(%271 : memref<!tpu.dma_semaphore, #tpu.memory_space<semaphore_mem>>) src(%arg5 : memref<128x512xf32, #tpu.memory_space<any>>) dst(%arg9 : memref<128x512xf32, #tpu.memory_space<vmem>>)
        tpu.yield
      }) : () -> ()
      %cst_78 = arith.constant 0.000000e+00 : f32
      %267 = vector.broadcast %cst_78 : f32 to vector<8x128xf32>
      %c0_79 = arith.constant 0 : index
      %c0_80 = arith.constant 0 : index
      %268 = vector.load %arg11[%c0_79, %c0_80] : memref<8x128xf32, #tpu.memory_space<vmem>>, vector<8x128xf32>
      tpu.vector_store %arg11[%c0_79, %c0_80], %267 {strides = array<i32>} : memref<8x128xf32, #tpu.memory_space<vmem>>, vector<8x128xf32>,
      %cst_81 = arith.constant 0.000000e+00 : f32
      %269 = vector.broadcast %cst_81 : f32 to vector<8x128xf32>
      %c0_82 = arith.constant 0 : index
      %c0_83 = arith.constant 0 : index
      %270 = vector.load %arg12[%c0_82, %c0_83] : memref<8x128xf32, #tpu.memory_space<vmem>>, vector<8x128xf32>
      tpu.vector_store %arg12[%c0_82, %c0_83], %269 {strides = array<i32>} : memref<8x128xf32, #tpu.memory_space<vmem>>, vector<8x128xf32>,
    } else {
    }
    %c0 = arith.constant 0 : index
    %c0_1 = arith.constant 0 : index
    %c0_2 = arith.constant 0 : index
    %3 = vector.load %arg2[%c0, %c0_1, %c0_2] : memref<8x8x32xf32, #tpu.memory_space<vmem>>, vector<8x8x32xf32>
    %4 = vector.shape_cast %3 : vector<8x8x32xf32> to vector<64x32xf32>
    %c0_3 = arith.constant 0 : index
    %c0_4 = arith.constant 0 : index
    %5 = vector.load %arg8[%c0_3, %c0_4] : memref<32x512xf32, #tpu.memory_space<vmem>>, vector<32x512xf32>
    %cst = arith.constant dense<0.000000e+00> : vector<64x512xf32>
    %6 = tpu.matmul %4, %5, %cst {dimension_numbers = #tpu.dot_dimension_numbers<[1], [0], [0], [1], [0, 0, 1, 1], [], []>} : vector<64x32xf32>, vector<32x512xf32>, vector<64x512xf32> -> vector<64x512xf32>
    %c0_5 = arith.constant 0 : index
    %c0_6 = arith.constant 0 : index
    %7 = vector.load %arg3[%c0_5, %c0_6] : memref<1x512xf32, #tpu.memory_space<vmem>>, vector<1x512xf32>
    %8 = vector.broadcast %7 : vector<1x512xf32> to vector<64x512xf32>
    %9 = arith.addf %6, %8 : vector<64x512xf32>
    %c0_7 = arith.constant 0 : index
    %c0_8 = arith.constant 0 : index
    %10 = vector.load %arg10[%c0_7, %c0_8] : memref<64x512xf32, #tpu.memory_space<vmem>>, vector<64x512xf32>
    tpu.vector_store %arg10[%c0_7, %c0_8], %9 {strides = array<i32>} : memref<64x512xf32, #tpu.memory_space<vmem>>, vector<64x512xf32>,
    %c0_9 = arith.constant 0 : index
    %c0_10 = arith.constant 0 : index
    %11 = vector.load %arg9[%c0_9, %c0_10] : memref<128x512xf32, #tpu.memory_space<vmem>>, vector<128x512xf32>
    %c0_11 = arith.constant 0 : index
    %c0_12 = arith.constant 0 : index
    %12 = vector.load %arg11[%c0_11, %c0_12] : memref<8x128xf32, #tpu.memory_space<vmem>>, vector<8x128xf32>
    %c0_13 = arith.constant 0 : index
    %c0_14 = arith.constant 0 : index
    %13 = vector.load %arg12[%c0_13, %c0_14] : memref<8x128xf32, #tpu.memory_space<vmem>>, vector<8x128xf32>
    %c0_i32_15 = arith.constant 0 : i32
    %c8_i32 = arith.constant 8 : i32
    %14 = arith.muli %c0_i32_15, %c8_i32 : i32
    %15 = tpu.assume_multiple %14, 8 : i32
    %16 = arith.index_cast %15 : i32 to index
    %c0_16 = arith.constant 0 : index
    %17 = vector.load %arg10[%16, %c0_16] : memref<64x512xf32, #tpu.memory_space<vmem>>, vector<8x512xf32>
    %cst_17 = arith.constant dense<0.000000e+00> : vector<8x512xf32>
    %18 = tpu.matmul %12, %11, %cst_17 {dimension_numbers = #tpu.dot_dimension_numbers<[1], [0], [0], [1], [0, 0, 1, 1], [], []>} : vector<8x128xf32>, vector<128x512xf32>, vector<8x512xf32> -> vector<8x512xf32>
    %19 = arith.addf %17, %18 : vector<8x512xf32>
    %20 = vector.extract_strided_slice %19 {offsets = [0, 0], sizes = [8, 256], strides = [1, 1]} : vector<8x512xf32> to vector<8x256xf32>
    %21 = arith.negf %20 : vector<8x256xf32>
    %22 = math.exp %21 : vector<8x256xf32>
    %cst_18 = arith.constant 1.000000e+00 : f32
    %23 = vector.broadcast %cst_18 : f32 to vector<8x256xf32>
    %24 = arith.addf %23, %22 : vector<8x256xf32>
    %25 = arith.divf %23, %24 : vector<8x256xf32>
    %26 = vector.extract_strided_slice %25 {offsets = [0, 0], sizes = [8, 128], strides = [1, 1]} : vector<8x256xf32> to vector<8x128xf32>
    %27 = vector.extract_strided_slice %25 {offsets = [0, 128], sizes = [8, 128], strides = [1, 1]} : vector<8x256xf32> to vector<8x128xf32>
    %28 = vector.extract_strided_slice %19 {offsets = [0, 256], sizes = [8, 128], strides = [1, 1]} : vector<8x512xf32> to vector<8x128xf32>
    %29 = math.tanh %28 : vector<8x128xf32>
    %30 = vector.extract_strided_slice %19 {offsets = [0, 384], sizes = [8, 128], strides = [1, 1]} : vector<8x512xf32> to vector<8x128xf32>
    %31 = arith.negf %30 : vector<8x128xf32>
    %32 = math.exp %31 : vector<8x128xf32>
    %cst_19 = arith.constant 1.000000e+00 : f32
    %33 = vector.broadcast %cst_19 : f32 to vector<8x128xf32>
    %34 = arith.addf %33, %32 : vector<8x128xf32>
    %35 = arith.divf %33, %34 : vector<8x128xf32>
    %36 = arith.mulf %27, %13 : vector<8x128xf32>
    %37 = arith.mulf %26, %29 : vector<8x128xf32>
    %38 = arith.addf %36, %37 : vector<8x128xf32>
    %39 = math.tanh %38 : vector<8x128xf32>
    %40 = arith.mulf %35, %39 : vector<8x128xf32>
    %41 = arith.index_cast %c0_i32_15 : i32 to index
    %c0_20 = arith.constant 0 : index
    %c0_21 = arith.constant 0 : index
    %42 = vector.load %arg6[%41, %c0_20, %c0_21] : memref<8x8x128xf32, #tpu.memory_space<vmem>>, vector<1x8x128xf32>
    %43 = vector.shape_cast %42 : vector<1x8x128xf32> to vector<8x128xf32>
    %44 = vector.shape_cast %40 : vector<8x128xf32> to vector<1x8x128xf32>
    tpu.vector_store %arg6[%41, %c0_20, %c0_21], %44 {strides = array<i32>} : memref<8x8x128xf32, #tpu.memory_space<vmem>>, vector<1x8x128xf32>,
    %c1_i32 = arith.constant 1 : i32
    %c8_i32_22 = arith.constant 8 : i32
    %45 = arith.muli %c1_i32, %c8_i32_22 : i32
    %46 = tpu.assume_multiple %45, 8 : i32
    %47 = arith.index_cast %46 : i32 to index
    %c0_23 = arith.constant 0 : index
    %48 = vector.load %arg10[%47, %c0_23] : memref<64x512xf32, #tpu.memory_space<vmem>>, vector<8x512xf32>
    %cst_24 = arith.constant dense<0.000000e+00> : vector<8x512xf32>
    %49 = tpu.matmul %40, %11, %cst_24 {dimension_numbers = #tpu.dot_dimension_numbers<[1], [0], [0], [1], [0, 0, 1, 1], [], []>} : vector<8x128xf32>, vector<128x512xf32>, vector<8x512xf32> -> vector<8x512xf32>
    %50 = arith.addf %48, %49 : vector<8x512xf32>
    %51 = vector.extract_strided_slice %50 {offsets = [0, 0], sizes = [8, 256], strides = [1, 1]} : vector<8x512xf32> to vector<8x256xf32>
    %52 = arith.negf %51 : vector<8x256xf32>
    %53 = math.exp %52 : vector<8x256xf32>
    %cst_25 = arith.constant 1.000000e+00 : f32
    %54 = vector.broadcast %cst_25 : f32 to vector<8x256xf32>
    %55 = arith.addf %54, %53 : vector<8x256xf32>
    %56 = arith.divf %54, %55 : vector<8x256xf32>
    %57 = vector.extract_strided_slice %56 {offsets = [0, 0], sizes = [8, 128], strides = [1, 1]} : vector<8x256xf32> to vector<8x128xf32>
    %58 = vector.extract_strided_slice %56 {offsets = [0, 128], sizes = [8, 128], strides = [1, 1]} : vector<8x256xf32> to vector<8x128xf32>
    %59 = vector.extract_strided_slice %50 {offsets = [0, 256], sizes = [8, 128], strides = [1, 1]} : vector<8x512xf32> to vector<8x128xf32>
    %60 = math.tanh %59 : vector<8x128xf32>
    %61 = vector.extract_strided_slice %50 {offsets = [0, 384], sizes = [8, 128], strides = [1, 1]} : vector<8x512xf32> to vector<8x128xf32>
    %62 = arith.negf %61 : vector<8x128xf32>
    %63 = math.exp %62 : vector<8x128xf32>
    %cst_26 = arith.constant 1.000000e+00 : f32
    %64 = vector.broadcast %cst_26 : f32 to vector<8x128xf32>
    %65 = arith.addf %64, %63 : vector<8x128xf32>
    %66 = arith.divf %64, %65 : vector<8x128xf32>
    %67 = arith.mulf %58, %38 : vector<8x128xf32>
    %68 = arith.mulf %57, %60 : vector<8x128xf32>
    %69 = arith.addf %67, %68 : vector<8x128xf32>
    %70 = math.tanh %69 : vector<8x128xf32>
    %71 = arith.mulf %66, %70 : vector<8x128xf32>
    %72 = arith.index_cast %c1_i32 : i32 to index
    %c0_27 = arith.constant 0 : index
    %c0_28 = arith.constant 0 : index
    %73 = vector.load %arg6[%72, %c0_27, %c0_28] : memref<8x8x128xf32, #tpu.memory_space<vmem>>, vector<1x8x128xf32>
    %74 = vector.shape_cast %73 : vector<1x8x128xf32> to vector<8x128xf32>
    %75 = vector.shape_cast %71 : vector<8x128xf32> to vector<1x8x128xf32>
    tpu.vector_store %arg6[%72, %c0_27, %c0_28], %75 {strides = array<i32>} : memref<8x8x128xf32, #tpu.memory_space<vmem>>, vector<1x8x128xf32>,
    %c2_i32 = arith.constant 2 : i32
    %c8_i32_29 = arith.constant 8 : i32
    %76 = arith.muli %c2_i32, %c8_i32_29 : i32
    %77 = tpu.assume_multiple %76, 8 : i32
    %78 = arith.index_cast %77 : i32 to index
    %c0_30 = arith.constant 0 : index
    %79 = vector.load %arg10[%78, %c0_30] : memref<64x512xf32, #tpu.memory_space<vmem>>, vector<8x512xf32>
    %cst_31 = arith.constant dense<0.000000e+00> : vector<8x512xf32>
    %80 = tpu.matmul %71, %11, %cst_31 {dimension_numbers = #tpu.dot_dimension_numbers<[1], [0], [0], [1], [0, 0, 1, 1], [], []>} : vector<8x128xf32>, vector<128x512xf32>, vector<8x512xf32> -> vector<8x512xf32>
    %81 = arith.addf %79, %80 : vector<8x512xf32>
    %82 = vector.extract_strided_slice %81 {offsets = [0, 0], sizes = [8, 256], strides = [1, 1]} : vector<8x512xf32> to vector<8x256xf32>
    %83 = arith.negf %82 : vector<8x256xf32>
    %84 = math.exp %83 : vector<8x256xf32>
    %cst_32 = arith.constant 1.000000e+00 : f32
    %85 = vector.broadcast %cst_32 : f32 to vector<8x256xf32>
    %86 = arith.addf %85, %84 : vector<8x256xf32>
    %87 = arith.divf %85, %86 : vector<8x256xf32>
    %88 = vector.extract_strided_slice %87 {offsets = [0, 0], sizes = [8, 128], strides = [1, 1]} : vector<8x256xf32> to vector<8x128xf32>
    %89 = vector.extract_strided_slice %87 {offsets = [0, 128], sizes = [8, 128], strides = [1, 1]} : vector<8x256xf32> to vector<8x128xf32>
    %90 = vector.extract_strided_slice %81 {offsets = [0, 256], sizes = [8, 128], strides = [1, 1]} : vector<8x512xf32> to vector<8x128xf32>
    %91 = math.tanh %90 : vector<8x128xf32>
    %92 = vector.extract_strided_slice %81 {offsets = [0, 384], sizes = [8, 128], strides = [1, 1]} : vector<8x512xf32> to vector<8x128xf32>
    %93 = arith.negf %92 : vector<8x128xf32>
    %94 = math.exp %93 : vector<8x128xf32>
    %cst_33 = arith.constant 1.000000e+00 : f32
    %95 = vector.broadcast %cst_33 : f32 to vector<8x128xf32>
    %96 = arith.addf %95, %94 : vector<8x128xf32>
    %97 = arith.divf %95, %96 : vector<8x128xf32>
    %98 = arith.mulf %89, %69 : vector<8x128xf32>
    %99 = arith.mulf %88, %91 : vector<8x128xf32>
    %100 = arith.addf %98, %99 : vector<8x128xf32>
    %101 = math.tanh %100 : vector<8x128xf32>
    %102 = arith.mulf %97, %101 : vector<8x128xf32>
    %103 = arith.index_cast %c2_i32 : i32 to index
    %c0_34 = arith.constant 0 : index
    %c0_35 = arith.constant 0 : index
    %104 = vector.load %arg6[%103, %c0_34, %c0_35] : memref<8x8x128xf32, #tpu.memory_space<vmem>>, vector<1x8x128xf32>
    %105 = vector.shape_cast %104 : vector<1x8x128xf32> to vector<8x128xf32>
    %106 = vector.shape_cast %102 : vector<8x128xf32> to vector<1x8x128xf32>
    tpu.vector_store %arg6[%103, %c0_34, %c0_35], %106 {strides = array<i32>} : memref<8x8x128xf32, #tpu.memory_space<vmem>>, vector<1x8x128xf32>,
    %c3_i32 = arith.constant 3 : i32
    %c8_i32_36 = arith.constant 8 : i32
    %107 = arith.muli %c3_i32, %c8_i32_36 : i32
    %108 = tpu.assume_multiple %107, 8 : i32
    %109 = arith.index_cast %108 : i32 to index
    %c0_37 = arith.constant 0 : index
    %110 = vector.load %arg10[%109, %c0_37] : memref<64x512xf32, #tpu.memory_space<vmem>>, vector<8x512xf32>
    %cst_38 = arith.constant dense<0.000000e+00> : vector<8x512xf32>
    %111 = tpu.matmul %102, %11, %cst_38 {dimension_numbers = #tpu.dot_dimension_numbers<[1], [0], [0], [1], [0, 0, 1, 1], [], []>} : vector<8x128xf32>, vector<128x512xf32>, vector<8x512xf32> -> vector<8x512xf32>
    %112 = arith.addf %110, %111 : vector<8x512xf32>
    %113 = vector.extract_strided_slice %112 {offsets = [0, 0], sizes = [8, 256], strides = [1, 1]} : vector<8x512xf32> to vector<8x256xf32>
    %114 = arith.negf %113 : vector<8x256xf32>
    %115 = math.exp %114 : vector<8x256xf32>
    %cst_39 = arith.constant 1.000000e+00 : f32
    %116 = vector.broadcast %cst_39 : f32 to vector<8x256xf32>
    %117 = arith.addf %116, %115 : vector<8x256xf32>
    %118 = arith.divf %116, %117 : vector<8x256xf32>
    %119 = vector.extract_strided_slice %118 {offsets = [0, 0], sizes = [8, 128], strides = [1, 1]} : vector<8x256xf32> to vector<8x128xf32>
    %120 = vector.extract_strided_slice %118 {offsets = [0, 128], sizes = [8, 128], strides = [1, 1]} : vector<8x256xf32> to vector<8x128xf32>
    %121 = vector.extract_strided_slice %112 {offsets = [0, 256], sizes = [8, 128], strides = [1, 1]} : vector<8x512xf32> to vector<8x128xf32>
    %122 = math.tanh %121 : vector<8x128xf32>
    %123 = vector.extract_strided_slice %112 {offsets = [0, 384], sizes = [8, 128], strides = [1, 1]} : vector<8x512xf32> to vector<8x128xf32>
    %124 = arith.negf %123 : vector<8x128xf32>
    %125 = math.exp %124 : vector<8x128xf32>
    %cst_40 = arith.constant 1.000000e+00 : f32
    %126 = vector.broadcast %cst_40 : f32 to vector<8x128xf32>
    %127 = arith.addf %126, %125 : vector<8x128xf32>
    %128 = arith.divf %126, %127 : vector<8x128xf32>
    %129 = arith.mulf %120, %100 : vector<8x128xf32>
    %130 = arith.mulf %119, %122 : vector<8x128xf32>
    %131 = arith.addf %129, %130 : vector<8x128xf32>
    %132 = math.tanh %131 : vector<8x128xf32>
    %133 = arith.mulf %128, %132 : vector<8x128xf32>
    %134 = arith.index_cast %c3_i32 : i32 to index
    %c0_41 = arith.constant 0 : index
    %c0_42 = arith.constant 0 : index
    %135 = vector.load %arg6[%134, %c0_41, %c0_42] : memref<8x8x128xf32, #tpu.memory_space<vmem>>, vector<1x8x128xf32>
    %136 = vector.shape_cast %135 : vector<1x8x128xf32> to vector<8x128xf32>
    %137 = vector.shape_cast %133 : vector<8x128xf32> to vector<1x8x128xf32>
    tpu.vector_store %arg6[%134, %c0_41, %c0_42], %137 {strides = array<i32>} : memref<8x8x128xf32, #tpu.memory_space<vmem>>, vector<1x8x128xf32>,
    %c4_i32 = arith.constant 4 : i32
    %c8_i32_43 = arith.constant 8 : i32
    %138 = arith.muli %c4_i32, %c8_i32_43 : i32
    %139 = tpu.assume_multiple %138, 8 : i32
    %140 = arith.index_cast %139 : i32 to index
    %c0_44 = arith.constant 0 : index
    %141 = vector.load %arg10[%140, %c0_44] : memref<64x512xf32, #tpu.memory_space<vmem>>, vector<8x512xf32>
    %cst_45 = arith.constant dense<0.000000e+00> : vector<8x512xf32>
    %142 = tpu.matmul %133, %11, %cst_45 {dimension_numbers = #tpu.dot_dimension_numbers<[1], [0], [0], [1], [0, 0, 1, 1], [], []>} : vector<8x128xf32>, vector<128x512xf32>, vector<8x512xf32> -> vector<8x512xf32>
    %143 = arith.addf %141, %142 : vector<8x512xf32>
    %144 = vector.extract_strided_slice %143 {offsets = [0, 0], sizes = [8, 256], strides = [1, 1]} : vector<8x512xf32> to vector<8x256xf32>
    %145 = arith.negf %144 : vector<8x256xf32>
    %146 = math.exp %145 : vector<8x256xf32>
    %cst_46 = arith.constant 1.000000e+00 : f32
    %147 = vector.broadcast %cst_46 : f32 to vector<8x256xf32>
    %148 = arith.addf %147, %146 : vector<8x256xf32>
    %149 = arith.divf %147, %148 : vector<8x256xf32>
    %150 = vector.extract_strided_slice %149 {offsets = [0, 0], sizes = [8, 128], strides = [1, 1]} : vector<8x256xf32> to vector<8x128xf32>
    %151 = vector.extract_strided_slice %149 {offsets = [0, 128], sizes = [8, 128], strides = [1, 1]} : vector<8x256xf32> to vector<8x128xf32>
    %152 = vector.extract_strided_slice %143 {offsets = [0, 256], sizes = [8, 128], strides = [1, 1]} : vector<8x512xf32> to vector<8x128xf32>
    %153 = math.tanh %152 : vector<8x128xf32>
    %154 = vector.extract_strided_slice %143 {offsets = [0, 384], sizes = [8, 128], strides = [1, 1]} : vector<8x512xf32> to vector<8x128xf32>
    %155 = arith.negf %154 : vector<8x128xf32>
    %156 = math.exp %155 : vector<8x128xf32>
    %cst_47 = arith.constant 1.000000e+00 : f32
    %157 = vector.broadcast %cst_47 : f32 to vector<8x128xf32>
    %158 = arith.addf %157, %156 : vector<8x128xf32>
    %159 = arith.divf %157, %158 : vector<8x128xf32>
    %160 = arith.mulf %151, %131 : vector<8x128xf32>
    %161 = arith.mulf %150, %153 : vector<8x128xf32>
    %162 = arith.addf %160, %161 : vector<8x128xf32>
    %163 = math.tanh %162 : vector<8x128xf32>
    %164 = arith.mulf %159, %163 : vector<8x128xf32>
    %165 = arith.index_cast %c4_i32 : i32 to index
    %c0_48 = arith.constant 0 : index
    %c0_49 = arith.constant 0 : index
    %166 = vector.load %arg6[%165, %c0_48, %c0_49] : memref<8x8x128xf32, #tpu.memory_space<vmem>>, vector<1x8x128xf32>
    %167 = vector.shape_cast %166 : vector<1x8x128xf32> to vector<8x128xf32>
    %168 = vector.shape_cast %164 : vector<8x128xf32> to vector<1x8x128xf32>
    tpu.vector_store %arg6[%165, %c0_48, %c0_49], %168 {strides = array<i32>} : memref<8x8x128xf32, #tpu.memory_space<vmem>>, vector<1x8x128xf32>,
    %c5_i32 = arith.constant 5 : i32
    %c8_i32_50 = arith.constant 8 : i32
    %169 = arith.muli %c5_i32, %c8_i32_50 : i32
    %170 = tpu.assume_multiple %169, 8 : i32
    %171 = arith.index_cast %170 : i32 to index
    %c0_51 = arith.constant 0 : index
    %172 = vector.load %arg10[%171, %c0_51] : memref<64x512xf32, #tpu.memory_space<vmem>>, vector<8x512xf32>
    %cst_52 = arith.constant dense<0.000000e+00> : vector<8x512xf32>
    %173 = tpu.matmul %164, %11, %cst_52 {dimension_numbers = #tpu.dot_dimension_numbers<[1], [0], [0], [1], [0, 0, 1, 1], [], []>} : vector<8x128xf32>, vector<128x512xf32>, vector<8x512xf32> -> vector<8x512xf32>
    %174 = arith.addf %172, %173 : vector<8x512xf32>
    %175 = vector.extract_strided_slice %174 {offsets = [0, 0], sizes = [8, 256], strides = [1, 1]} : vector<8x512xf32> to vector<8x256xf32>
    %176 = arith.negf %175 : vector<8x256xf32>
    %177 = math.exp %176 : vector<8x256xf32>
    %cst_53 = arith.constant 1.000000e+00 : f32
    %178 = vector.broadcast %cst_53 : f32 to vector<8x256xf32>
    %179 = arith.addf %178, %177 : vector<8x256xf32>
    %180 = arith.divf %178, %179 : vector<8x256xf32>
    %181 = vector.extract_strided_slice %180 {offsets = [0, 0], sizes = [8, 128], strides = [1, 1]} : vector<8x256xf32> to vector<8x128xf32>
    %182 = vector.extract_strided_slice %180 {offsets = [0, 128], sizes = [8, 128], strides = [1, 1]} : vector<8x256xf32> to vector<8x128xf32>
    %183 = vector.extract_strided_slice %174 {offsets = [0, 256], sizes = [8, 128], strides = [1, 1]} : vector<8x512xf32> to vector<8x128xf32>
    %184 = math.tanh %183 : vector<8x128xf32>
    %185 = vector.extract_strided_slice %174 {offsets = [0, 384], sizes = [8, 128], strides = [1, 1]} : vector<8x512xf32> to vector<8x128xf32>
    %186 = arith.negf %185 : vector<8x128xf32>
    %187 = math.exp %186 : vector<8x128xf32>
    %cst_54 = arith.constant 1.000000e+00 : f32
    %188 = vector.broadcast %cst_54 : f32 to vector<8x128xf32>
    %189 = arith.addf %188, %187 : vector<8x128xf32>
    %190 = arith.divf %188, %189 : vector<8x128xf32>
    %191 = arith.mulf %182, %162 : vector<8x128xf32>
    %192 = arith.mulf %181, %184 : vector<8x128xf32>
    %193 = arith.addf %191, %192 : vector<8x128xf32>
    %194 = math.tanh %193 : vector<8x128xf32>
    %195 = arith.mulf %190, %194 : vector<8x128xf32>
    %196 = arith.index_cast %c5_i32 : i32 to index
    %c0_55 = arith.constant 0 : index
    %c0_56 = arith.constant 0 : index
    %197 = vector.load %arg6[%196, %c0_55, %c0_56] : memref<8x8x128xf32, #tpu.memory_space<vmem>>, vector<1x8x128xf32>
    %198 = vector.shape_cast %197 : vector<1x8x128xf32> to vector<8x128xf32>
    %199 = vector.shape_cast %195 : vector<8x128xf32> to vector<1x8x128xf32>
    tpu.vector_store %arg6[%196, %c0_55, %c0_56], %199 {strides = array<i32>} : memref<8x8x128xf32, #tpu.memory_space<vmem>>, vector<1x8x128xf32>,
    %c6_i32 = arith.constant 6 : i32
    %c8_i32_57 = arith.constant 8 : i32
    %200 = arith.muli %c6_i32, %c8_i32_57 : i32
    %201 = tpu.assume_multiple %200, 8 : i32
    %202 = arith.index_cast %201 : i32 to index
    %c0_58 = arith.constant 0 : index
    %203 = vector.load %arg10[%202, %c0_58] : memref<64x512xf32, #tpu.memory_space<vmem>>, vector<8x512xf32>
    %cst_59 = arith.constant dense<0.000000e+00> : vector<8x512xf32>
    %204 = tpu.matmul %195, %11, %cst_59 {dimension_numbers = #tpu.dot_dimension_numbers<[1], [0], [0], [1], [0, 0, 1, 1], [], []>} : vector<8x128xf32>, vector<128x512xf32>, vector<8x512xf32> -> vector<8x512xf32>
    %205 = arith.addf %203, %204 : vector<8x512xf32>
    %206 = vector.extract_strided_slice %205 {offsets = [0, 0], sizes = [8, 256], strides = [1, 1]} : vector<8x512xf32> to vector<8x256xf32>
    %207 = arith.negf %206 : vector<8x256xf32>
    %208 = math.exp %207 : vector<8x256xf32>
    %cst_60 = arith.constant 1.000000e+00 : f32
    %209 = vector.broadcast %cst_60 : f32 to vector<8x256xf32>
    %210 = arith.addf %209, %208 : vector<8x256xf32>
    %211 = arith.divf %209, %210 : vector<8x256xf32>
    %212 = vector.extract_strided_slice %211 {offsets = [0, 0], sizes = [8, 128], strides = [1, 1]} : vector<8x256xf32> to vector<8x128xf32>
    %213 = vector.extract_strided_slice %211 {offsets = [0, 128], sizes = [8, 128], strides = [1, 1]} : vector<8x256xf32> to vector<8x128xf32>
    %214 = vector.extract_strided_slice %205 {offsets = [0, 256], sizes = [8, 128], strides = [1, 1]} : vector<8x512xf32> to vector<8x128xf32>
    %215 = math.tanh %214 : vector<8x128xf32>
    %216 = vector.extract_strided_slice %205 {offsets = [0, 384], sizes = [8, 128], strides = [1, 1]} : vector<8x512xf32> to vector<8x128xf32>
    %217 = arith.negf %216 : vector<8x128xf32>
    %218 = math.exp %217 : vector<8x128xf32>
    %cst_61 = arith.constant 1.000000e+00 : f32
    %219 = vector.broadcast %cst_61 : f32 to vector<8x128xf32>
    %220 = arith.addf %219, %218 : vector<8x128xf32>
    %221 = arith.divf %219, %220 : vector<8x128xf32>
    %222 = arith.mulf %213, %193 : vector<8x128xf32>
    %223 = arith.mulf %212, %215 : vector<8x128xf32>
    %224 = arith.addf %222, %223 : vector<8x128xf32>
    %225 = math.tanh %224 : vector<8x128xf32>
    %226 = arith.mulf %221, %225 : vector<8x128xf32>
    %227 = arith.index_cast %c6_i32 : i32 to index
    %c0_62 = arith.constant 0 : index
    %c0_63 = arith.constant 0 : index
    %228 = vector.load %arg6[%227, %c0_62, %c0_63] : memref<8x8x128xf32, #tpu.memory_space<vmem>>, vector<1x8x128xf32>
    %229 = vector.shape_cast %228 : vector<1x8x128xf32> to vector<8x128xf32>
    %230 = vector.shape_cast %226 : vector<8x128xf32> to vector<1x8x128xf32>
    tpu.vector_store %arg6[%227, %c0_62, %c0_63], %230 {strides = array<i32>} : memref<8x8x128xf32, #tpu.memory_space<vmem>>, vector<1x8x128xf32>,
    %c7_i32 = arith.constant 7 : i32
    %c8_i32_64 = arith.constant 8 : i32
    %231 = arith.muli %c7_i32, %c8_i32_64 : i32
    %232 = tpu.assume_multiple %231, 8 : i32
    %233 = arith.index_cast %232 : i32 to index
    %c0_65 = arith.constant 0 : index
    %234 = vector.load %arg10[%233, %c0_65] : memref<64x512xf32, #tpu.memory_space<vmem>>, vector<8x512xf32>
    %cst_66 = arith.constant dense<0.000000e+00> : vector<8x512xf32>
    %235 = tpu.matmul %226, %11, %cst_66 {dimension_numbers = #tpu.dot_dimension_numbers<[1], [0], [0], [1], [0, 0, 1, 1], [], []>} : vector<8x128xf32>, vector<128x512xf32>, vector<8x512xf32> -> vector<8x512xf32>
    %236 = arith.addf %234, %235 : vector<8x512xf32>
    %237 = vector.extract_strided_slice %236 {offsets = [0, 0], sizes = [8, 256], strides = [1, 1]} : vector<8x512xf32> to vector<8x256xf32>
    %238 = arith.negf %237 : vector<8x256xf32>
    %239 = math.exp %238 : vector<8x256xf32>
    %cst_67 = arith.constant 1.000000e+00 : f32
    %240 = vector.broadcast %cst_67 : f32 to vector<8x256xf32>
    %241 = arith.addf %240, %239 : vector<8x256xf32>
    %242 = arith.divf %240, %241 : vector<8x256xf32>
    %243 = vector.extract_strided_slice %242 {offsets = [0, 0], sizes = [8, 128], strides = [1, 1]} : vector<8x256xf32> to vector<8x128xf32>
    %244 = vector.extract_strided_slice %242 {offsets = [0, 128], sizes = [8, 128], strides = [1, 1]} : vector<8x256xf32> to vector<8x128xf32>
    %245 = vector.extract_strided_slice %236 {offsets = [0, 256], sizes = [8, 128], strides = [1, 1]} : vector<8x512xf32> to vector<8x128xf32>
    %246 = math.tanh %245 : vector<8x128xf32>
    %247 = vector.extract_strided_slice %236 {offsets = [0, 384], sizes = [8, 128], strides = [1, 1]} : vector<8x512xf32> to vector<8x128xf32>
    %248 = arith.negf %247 : vector<8x128xf32>
    %249 = math.exp %248 : vector<8x128xf32>
    %cst_68 = arith.constant 1.000000e+00 : f32
    %250 = vector.broadcast %cst_68 : f32 to vector<8x128xf32>
    %251 = arith.addf %250, %249 : vector<8x128xf32>
    %252 = arith.divf %250, %251 : vector<8x128xf32>
    %253 = arith.mulf %244, %224 : vector<8x128xf32>
    %254 = arith.mulf %243, %246 : vector<8x128xf32>
    %255 = arith.addf %253, %254 : vector<8x128xf32>
    %256 = math.tanh %255 : vector<8x128xf32>
    %257 = arith.mulf %252, %256 : vector<8x128xf32>
    %258 = arith.index_cast %c7_i32 : i32 to index
    %c0_69 = arith.constant 0 : index
    %c0_70 = arith.constant 0 : index
    %259 = vector.load %arg6[%258, %c0_69, %c0_70] : memref<8x8x128xf32, #tpu.memory_space<vmem>>, vector<1x8x128xf32>
    %260 = vector.shape_cast %259 : vector<1x8x128xf32> to vector<8x128xf32>
    %261 = vector.shape_cast %257 : vector<8x128xf32> to vector<1x8x128xf32>
    tpu.vector_store %arg6[%258, %c0_69, %c0_70], %261 {strides = array<i32>} : memref<8x8x128xf32, #tpu.memory_space<vmem>>, vector<1x8x128xf32>,
    %c8_i32_71 = arith.constant 8 : i32
    %c0_72 = arith.constant 0 : index
    %c0_73 = arith.constant 0 : index
    %262 = vector.load %arg11[%c0_72, %c0_73] : memref<8x128xf32, #tpu.memory_space<vmem>>, vector<8x128xf32>
    tpu.vector_store %arg11[%c0_72, %c0_73], %257 {strides = array<i32>} : memref<8x128xf32, #tpu.memory_space<vmem>>, vector<8x128xf32>,
    %c0_74 = arith.constant 0 : index
    %c0_75 = arith.constant 0 : index
    %263 = vector.load %arg12[%c0_74, %c0_75] : memref<8x128xf32, #tpu.memory_space<vmem>>, vector<8x128xf32>
    tpu.vector_store %arg12[%c0_74, %c0_75], %255 {strides = array<i32>} : memref<8x128xf32, #tpu.memory_space<vmem>>, vector<8x128xf32>,
    %c0_i32_76 = arith.constant 0 : i32
    %264 = arith.cmpi eq, %arg1, %c0_i32_76 : i32
    %265 = arith.extui %264 : i1 to i32
    %c0_i32_77 = arith.constant 0 : i32
    %266 = arith.cmpi ne, %265, %c0_i32_77 : i32
    scf.if %266 {
      %c0_78 = arith.constant 0 : index
      %c0_79 = arith.constant 0 : index
      %267 = vector.load %arg7[%c0_78, %c0_79] : memref<8x128xf32, #tpu.memory_space<vmem>>, vector<8x128xf32>
      tpu.vector_store %arg7[%c0_78, %c0_79], %255 {strides = array<i32>} : memref<8x128xf32, #tpu.memory_space<vmem>>, vector<8x128xf32>,
    } else {
    }
    return
  }
  func.func @transform_0(%arg0: i32, %arg1: i32) -> (i32, i32, i32) {
    %c0_i32 = arith.constant 0 : i32
    %c0_i32_0 = arith.constant 0 : i32
    return %arg1, %arg0, %c0_i32 : i32, i32, i32
  }
  func.func @transform_1(%arg0: i32, %arg1: i32) -> (i32, i32) {
    %c0_i32 = arith.constant 0 : i32
    %c0_i32_0 = arith.constant 0 : i32
    %c0_i32_1 = arith.constant 0 : i32
    return %c0_i32, %c0_i32_0 : i32, i32
  }
  func.func @transform_4(%arg0: i32, %arg1: i32) -> (i32, i32, i32) {
    %c0_i32 = arith.constant 0 : i32
    %c0_i32_0 = arith.constant 0 : i32
    return %arg1, %arg0, %c0_i32 : i32, i32, i32
  }
  func.func @transform_5(%arg0: i32, %arg1: i32) -> (i32, i32) {
    %c0_i32 = arith.constant 0 : i32
    %c0_i32_0 = arith.constant 0 : i32
    return %arg0, %c0_i32 : i32, i32
  }
}

</mosaic_0001>

<bundles_post_ra>
// kernel: tpu_custom_call.1
= control target key start
LH: loop header
LB: loop body
LE: loop exit
PB: predicated region body
PF: predicated region fallthrough
CT: control target
= control target key end

     0   :  { %11 = vsyncpa [#allocation8], 0  ;;  %s3414_s0 = inlined_call_operand.hbm [shape: f32[8,8,32], index: 0, kind: input, shape index: {}]   ;;  %s3415_s1 = inlined_call_operand.hbm [shape: f32[1,512], index: 1, kind: input, shape index: {}]   ;;  %s3416_s2 = inlined_call_operand.hbm [shape: f32[32,512], index: 2, kind: input, shape index: {}]   ;;  %s3417_s3 = inlined_call_operand.hbm [shape: f32[128,512], index: 3, kind: input, shape index: {}]   ;;  %s3418_s4 = inlined_call_operand.hbm [shape: f32[8,8,128], index: 4, kind: output, shape index: {0}]   ;;  %s3419_s5 = inlined_call_operand.hbm [shape: f32[8,128], index: 5, kind: output, shape index: {1}]  }
   0x1   :  { %12 = vsyncpa [#allocation11], 0 }
   0x2   :  { %13 = vsyncpa [#allocation9], 0 }
   0x3   :  { %14 = vsyncpa [#allocation14], 0  ;;  %s2863_s18 = smov [#allocation7]   ;;  %s2719_s22 = scalar_lea.hbm %s3414_s0, 1024 }
   0x4   :  { %s20_s19 = sshll.u32 %s2863_s18, 4  ;;  %p2720_p0 = scmp.ne.s32.totalorder %s3414_s0, %s2719_s22  ;;  %s21_s19 = int_to_ptr.vmem [resolvable:$true] %s20_s19 }
   0x5   :  { %p2723_p1 = scmp.lt.u32.totalorder %s2719_s22, %s3414_s0 }
   0x7   :  { %p2725_p2 = pnand %p2723_p1, %p2720_p0 }
   0x9   :  { %2728 = shalt.err (!%p2725_p2)
}
   0xa   :  { %s2729_s27 = scalar_lea.vmem %s21_s19, 1024  ;;  %p2734_p4 = scmp.lt.s32.totalorder %s21_s19, %s21_s19 }
   0xb   :  { %p2730_p3 = scmp.ne.s32.totalorder %s21_s19, %s2729_s27  ;;  %p2735_p5 = scmp.lt.s32.totalorder %s2729_s27, %s2729_s27 }
   0xd   :  { %p2736_p6 = por %p2735_p5, %p2734_p4 }
   0xf   :  { %p2737_p7 = pnand %p2736_p6, %p2730_p3 }
  0x11   :  { %2740 = shalt.err (!%p2737_p7)
}
  0x12   :  { %s2864_s28 = smov 128   ;;  %s2865_s29 = smov 8  }
  0x13   :  { %26 = dma.hbm_to_vmem [thread:$0]  %s3414_s0, 1024, %s21_s19, [#allocation8], %s2864_s28, %s2864_s28, %s2865_s29  }
  0x14   :  { %s2866_s7 = smov [#allocation10]   ;;  %s2741_s11 = scalar_lea.hbm %s3415_s1, 64 }
  0x15   :  { %s33_s8 = sshll.u32 %s2866_s7, 4  ;;  %p2742_p8 = scmp.ne.s32.totalorder %s3415_s1, %s2741_s11  ;;  %s34_s8 = int_to_ptr.vmem [resolvable:$true] %s33_s8 }
  0x16   :  { %p2745_p9 = scmp.lt.u32.totalorder %s2741_s11, %s3415_s1 }
  0x18   :  { %p2747_p10 = pnand %p2745_p9, %p2742_p8 }
  0x1a   :  { %2750 = shalt.err (!%p2747_p10)
}
  0x1b   :  { %s2751_s16 = scalar_lea.vmem %s34_s8, 64  ;;  %p2756_p12 = scmp.lt.s32.totalorder %s34_s8, %s34_s8 }
  0x1c   :  { %p2752_p11 = scmp.ne.s32.totalorder %s34_s8, %s2751_s16  ;;  %p2757_p13 = scmp.lt.s32.totalorder %s2751_s16, %s2751_s16 }
  0x1e   :  { %p2758_p0 = por %p2757_p13, %p2756_p12 }
  0x20   :  { %p2759_p1 = pnand %p2758_p0, %p2752_p11 }
  0x22   :  { %2762 = shalt.err (!%p2759_p1)
}
  0x23   :  { %36 = dma.hbm_to_vmem [thread:$0]  %s3415_s1, 64, %s34_s8, [#allocation11]  }
  0x24   :  { %2851 = dma.done.wait [#allocation8], 1024  }
  0x25   :  { %2852 = vsyncadd [#allocation8], 4294966272 }
  0x26   :  { %2853 = dma.done.wait [#allocation11], 64  }
  0x27   :  { %2854 = vsyncadd [#allocation11], 4294967232 }
  0x28   :  { %s2867_s18 = smov [#allocation2]   ;;  %s2763_s22 = scalar_lea.hbm %s3416_s2, 2048 }
  0x29   :  { %s54_s19 = sshll.u32 %s2867_s18, 4  ;;  %p2764_p2 = scmp.ne.s32.totalorder %s3416_s2, %s2763_s22  ;;  %s55_s19 = int_to_ptr.vmem [resolvable:$true] %s54_s19 }
  0x2a   :  { %p2767_p3 = scmp.lt.u32.totalorder %s2763_s22, %s3416_s2 }
  0x2c   :  { %p2769_p4 = pnand %p2767_p3, %p2764_p2 }
  0x2e   :  { %2772 = shalt.err (!%p2769_p4)  }
  0x2f   :  { %s2773_s1 = scalar_lea.vmem %s55_s19, 2048  ;;  %p2778_p6 = scmp.lt.s32.totalorder %s55_s19, %s55_s19 }
  0x30   :  { %p2774_p5 = scmp.ne.s32.totalorder %s55_s19, %s2773_s1  ;;  %p2779_p7 = scmp.lt.s32.totalorder %s2773_s1, %s2773_s1 }
  0x32   :  { %p2780_p8 = por %p2779_p7, %p2778_p6 }
  0x34   :  { %p2781_p9 = pnand %p2780_p8, %p2774_p5 }
  0x36   :  { %2784 = shalt.err (!%p2781_p9)  }
  0x37   :  { %57 = dma.hbm_to_vmem [thread:$0]  %s3416_s2, 2048, %s55_s19, [#allocation15] }
  0x38   :  { %2855 = dma.done.wait [#allocation15], 2048 }
  0x39   :  { %2856 = vsyncadd [#allocation15], 4294965248 }
  0x3a   :  { %s2868_s6 = smov [#allocation3]   ;;  %s2785_s10 = scalar_lea.hbm %s3417_s3, 8192 }
  0x3b   :  { %s69_s7 = sshll.u32 %s2868_s6, 4  ;;  %p2786_p10 = scmp.ne.s32.totalorder %s3417_s3, %s2785_s10  ;;  %s70_s7 = int_to_ptr.vmem [resolvable:$true] %s69_s7 }
  0x3c   :  { %p2789_p11 = scmp.lt.u32.totalorder %s2785_s10, %s3417_s3 }
  0x3e   :  { %p2791_p12 = pnand %p2789_p11, %p2786_p10 }
  0x40   :  { %2794 = shalt.err (!%p2791_p12)  }
  0x41   :  { %s2795_s2 = scalar_lea.vmem %s70_s7, 8192  ;;  %p2800_p0 = scmp.lt.s32.totalorder %s70_s7, %s70_s7 }
  0x42   :  { %p2796_p13 = scmp.ne.s32.totalorder %s70_s7, %s2795_s2  ;;  %p2801_p1 = scmp.lt.s32.totalorder %s2795_s2, %s2795_s2 }
  0x44   :  { %p2802_p2 = por %p2801_p1, %p2800_p0 }
  0x46   :  { %p2803_p3 = pnand %p2802_p2, %p2796_p13 }
  0x48   :  { %2806 = shalt.err (!%p2803_p3)  }
  0x49   :  { %72 = dma.hbm_to_vmem [thread:$0]  %s3417_s3, 8192, %s70_s7, [#allocation20] }
  0x4a   :  { %2857 = dma.done.wait [#allocation20], 8192 }
  0x4b   :  { %2858 = vsyncadd [#allocation20], 4294959104  ;;  %v88_v0 = vld [vmem:[#allocation2 + $0x8] sm:$0xff]  ;;  %v90_v2 = vld [vmem:[#allocation2 + $0x18] sm:$0xff]  ;;  %v2869_v7 = vmov 0.0   ;;  %vm125_vm0 = vcmask 261120  }
  0x4c   :  { %v92_v1 = vld [vmem:[#allocation2 + $0x28] sm:$0xff]  ;;  %v94_v4 = vld [vmem:[#allocation2 + $0x38] sm:$0xff]  ;;  %v87_v5 = vld [vmem:[#allocation2] sm:$0xff]  ;;  %214 = vmatprep.mubr.f32.mxu0 %v2869_v7  ;;  %327 = vmatprep.mubr.f32.mxu1 %v2869_v7  ;;  %s2870_s3 = smov [#allocation13]  }
  0x4d   :  { %v1990_v3 = vpack.c.bf16 %v92_v1, %v88_v0  ;;  %v91_v6 = vld [vmem:[#allocation2 + $0x20] sm:$0xff]  ;;  %v1998_v8 = vpack.c.bf16 %v94_v4, %v90_v2  ;;  %v89_v10 = vld [vmem:[#allocation2 + $0x10] sm:$0xff]  ;;  %v96_v12 = vld [vmem:[#allocation2 + $0x48] sm:$0xff]  ;;  %s1929_s0 = sshll.u32 %s2870_s3, 4  ;;  %s1930_s0 = int_to_ptr.vmem [resolvable:$true] %s1929_s0 }
  0x4e   :  { %v1992_v9 = vpack.c.bf16 %v91_v6, %v87_v5  ;;  %v93_v11 = vld [vmem:[#allocation2 + $0x30] sm:$0xff]  ;;  %v100_v14 = vld [vmem:[#allocation2 + $0x68] sm:$0xff]  ;;  %v98_v15 = vld [vmem:[#allocation2 + $0x58] sm:$0xff]  ;;  %s2807_s17 = scalar_lea.vmem %s1930_s0, 128  ;;  %p2812_p5 = scmp.lt.s32.totalorder %s1930_s0, %s1930_s0 }
  0x4f   :  { %1991 = vmatprep.subr.bf16.mxu0 %v1990_v3  ;;  %v2000_v13 = vpack.c.bf16 %v93_v11, %v89_v10  ;;  %v102_v16 = vld [vmem:[#allocation2 + $0x78] sm:$0xff]  ;;  %1999 = vmatprep.subr.bf16.mxu1 %v1998_v8  ;;  %v1994_v17 = vpack.c.bf16 %v100_v14, %v96_v12  ;;  %v95_v19 = vld [vmem:[#allocation2 + $0x40] sm:$0xff]  ;;  %v97_v21 = vld [vmem:[#allocation2 + $0x50] sm:$0xff]  ;;  %p2808_p4 = scmp.ne.s32.totalorder %s1930_s0, %s2807_s17  ;;  %p2813_p6 = scmp.lt.s32.totalorder %s2807_s17, %s2807_s17 }
  0x50   :  { %1993 = vmatpush1.bf16.msra.mxu0 %v1992_v9  ;;  %v2002_v18 = vpack.c.bf16 %v102_v16, %v98_v15  ;;  %v99_v20 = vld [vmem:[#allocation2 + $0x60] sm:$0xff]  ;;  %v101_v23 = vld [vmem:[#allocation2 + $0x70] sm:$0xff]  ;;  %v409_v24 = vld [vmem:[#allocation3 + $0x8] sm:$0xff] }
  0x51   :  { %2001 = vmatpush1.bf16.msra.mxu1 %v2000_v13  ;;  %v1996_v22 = vpack.c.bf16 %v99_v20, %v95_v19  ;;  %1995 = vmatprep.subr.bf16.mxu0 %v1994_v17  ;;  %v2004_v25 = vpack.c.bf16 %v101_v23, %v97_v21  ;;  %v413_v26 = vld [vmem:[#allocation3 + $0x28] sm:$0xff]  ;;  %v411_v27 = vld [vmem:[#allocation3 + $0x18] sm:$0xff]  ;;  %v408_v31 = vld [vmem:[#allocation3] sm:$0xff]  ;;  %p2814_p7 = por %p2813_p6, %p2812_p5 }
  0x52   :  { %2003 = vmatprep.subr.bf16.mxu1 %v2002_v18  ;;  %v415_v28 = vld [vmem:[#allocation3 + $0x38] sm:$0xff]  ;;  %v2955_v29 = vpack.c.bf16 %v413_v26, %v409_v24  ;;  %v412_v32 = vld [vmem:[#allocation3 + $0x20] sm:$0xff]  ;;  %v410_v33 = vld [vmem:[#allocation3 + $0x10] sm:$0xff] }
  0x53   :  { %v2957_v30 = vpack.c.bf16 %v415_v28, %v411_v27  ;;  %v79_v34 = vld [vmem:[#allocation7] sm:$0xff]  ;;  %v2959_v35 = vpack.c.bf16 %v412_v32, %v408_v31  ;;  %v414_v36 = vld [vmem:[#allocation3 + $0x30] sm:$0xff]  ;;  %v417_v37 = vld [vmem:[#allocation3 + $0x48] sm:$0xff]  ;;  %p2815_p8 = pnand %p2814_p7, %p2808_p4 }
  0x54   :  { %1997 = vmatpush1.bf16.msra.mxu0 %v1996_v22  ;;  %v2962_v38 = vpack.c.bf16 %v414_v36, %v410_v33  ;;  %v421_v39 = vld [vmem:[#allocation3 + $0x68] sm:$0xff]  ;;  %v419_v40 = vld [vmem:[#allocation3 + $0x58] sm:$0xff]  ;;  %v416_v43 = vld [vmem:[#allocation3 + $0x40] sm:$0xff] }
  0x55   :  { %2005 = vmatpush1.bf16.msra.mxu1 %v2004_v25  ;;  %2007 = vmatprep.subr.bf16.mxu0 %v2955_v29  ;;  %v423_v41 = vld [vmem:[#allocation3 + $0x78] sm:$0xff]  ;;  %v2965_v42 = vpack.c.bf16 %v421_v39, %v417_v37  ;;  %v420_v44 = vld [vmem:[#allocation3 + $0x60] sm:$0xff]  ;;  %v418_v45 = vld [vmem:[#allocation3 + $0x50] sm:$0xff] }
  0x56   :  { %2039 = vmatprep.subr.bf16.mxu1 %v2957_v30  ;;  %v80_v46 = vld [vmem:[#allocation7 + $0x8] sm:$0xff]  ;;  %v2968_v47 = vpack.c.bf16 %v423_v41, %v419_v40  ;;  %v422_v48 = vld [vmem:[#allocation3 + $0x70] sm:$0xff]  ;;  %v2972_v50 = vpack.c.bf16 %v420_v44, %v416_v43  ;;  %v427_v52 = vld [vmem:[#allocation3 + $0x98] sm:$0xff] }
  0x57   :  { %1950 = vmatmul.mubr.msk.f32.vlgmr.msra.gmra.mrb[0].mxu0 %vm125_vm0, %v79_v34  ;;  %v425_v49 = vld [vmem:[#allocation3 + $0x88] sm:$0xff]  ;;  %v431_v53 = vld [vmem:[#allocation3 + $0xb8] sm:$0xff]  ;;  %v2976_v54 = vpack.c.bf16 %v422_v48, %v418_v45  ;;  %v424_v55 = vld [vmem:[#allocation3 + $0x80] sm:$0xff] }
  0x58   :  { %1958 = vmatmul.mubr.msk.f32.vlgmr.msra.gmra.mrb[0].mxu1 %vm125_vm0, %v79_v34  ;;  %2009 = vmatpush1.bf16.msra.mxu0 %v2959_v35  ;;  %v429_v51 = vld [vmem:[#allocation3 + $0xa8] sm:$0xff]  ;;  %v428_v56 = vld [vmem:[#allocation3 + $0xa0] sm:$0xff]  ;;  %v426_v58 = vld [vmem:[#allocation3 + $0x90] sm:$0xff]  ;;  %v2984_v60 = vpack.c.bf16 %v431_v53, %v427_v52 }
  0x59   :  { %2041 = vmatpush1.bf16.msra.mxu1 %v2962_v38  ;;  %220 = vmatprep.mubr.f32.mxu0 %v2869_v7  ;;  %v2980_v57 = vpack.c.bf16 %v429_v51, %v425_v49  ;;  %v430_v59 = vld [vmem:[#allocation3 + $0xb0] sm:$0xff]  ;;  %v433_v61 = vld [vmem:[#allocation3 + $0xc8] sm:$0xff]  ;;  %v2988_v0 = vpack.c.bf16 %v428_v56, %v424_v55  ;;  %v435_v1 = vld [vmem:[#allocation3 + $0xd8] sm:$0xff] }
  0x5a   :  { %333 = vmatprep.mubr.f32.mxu1 %v2869_v7  ;;  %2011 = vmatprep.subr.bf16.mxu0 %v2965_v42  ;;  %v437_v62 = vld [vmem:[#allocation3 + $0xe8] sm:$0xff]  ;;  %v81_v63 = vld [vmem:[#allocation7 + $0x10] sm:$0xff]  ;;  %v439_v2 = vld [vmem:[#allocation3 + $0xf8] sm:$0xff]  ;;  %v2992_v3 = vpack.c.bf16 %v430_v59, %v426_v58 }
  0x5b   :  { %1951 = vmatmul.mubr.msk.f32.gmra.mrb[2].mxu0 %vm125_vm0, %v80_v46  ;;  %2043 = vmatprep.subr.bf16.mxu1 %v2968_v47  ;;  %v432_v4 = vld [vmem:[#allocation3 + $0xc0] sm:$0xff]  ;;  %v2996_v6 = vpack.c.bf16 %v437_v62, %v433_v61  ;;  %v434_v8 = vld [vmem:[#allocation3 + $0xd0] sm:$0xff]  ;;  %v3000_v10 = vpack.c.bf16 %v439_v2, %v435_v1  ;;  %v441_v11 = vld [vmem:[#allocation3 + $0x108] sm:$0xff] }
  0x5c   :  { %1959 = vmatmul.mubr.msk.f32.gmra.mrb[2].mxu1 %vm125_vm0, %v80_v46  ;;  %2013 = vmatpush1.bf16.msra.mxu0 %v2972_v50  ;;  %v436_v5 = vld [vmem:[#allocation3 + $0xe0] sm:$0xff]  ;;  %v438_v9 = vld [vmem:[#allocation3 + $0xf0] sm:$0xff]  ;;  %v445_v12 = vld [vmem:[#allocation3 + $0x128] sm:$0xff] }
  0x5d   :  { %2045 = vmatpush1.bf16.msra.mxu1 %v2976_v54  ;;  %226 = vmatprep.mubr.f32.mxu0 %v2869_v7  ;;  %v82_v13 = vld [vmem:[#allocation7 + $0x18] sm:$0xff]  ;;  %v3004_v14 = vpack.c.bf16 %v436_v5, %v432_v4  ;;  %v3008_v17 = vpack.c.bf16 %v438_v9, %v434_v8  ;;  %v440_v18 = vld [vmem:[#allocation3 + $0x100] sm:$0xff]  ;;  %v3012_v20 = vpack.c.bf16 %v445_v12, %v441_v11  ;;  %v442_v21 = vld [vmem:[#allocation3 + $0x110] sm:$0xff] }
  0x5e   :  { %339 = vmatprep.mubr.f32.mxu1 %v2869_v7  ;;  %2015 = vmatprep.subr.bf16.mxu0 %v2980_v57  ;;  %v443_v15 = vld [vmem:[#allocation3 + $0x118] sm:$0xff]  ;;  %v444_v19 = vld [vmem:[#allocation3 + $0x120] sm:$0xff]  ;;  %v446_v22 = vld [vmem:[#allocation3 + $0x130] sm:$0xff] }
  0x5f   :  { %1952 = vmatmul.mubr.msk.f32.gmra.mrb[4].mxu0 %vm125_vm0, %v81_v63  ;;  %2047 = vmatprep.subr.bf16.mxu1 %v2984_v60  ;;  %v447_v16 = vld [vmem:[#allocation3 + $0x138] sm:$0xff]  ;;  %v449_v24 = vld [vmem:[#allocation3 + $0x148] sm:$0xff]  ;;  %v83_v26 = vld [vmem:[#allocation7 + $0x20] sm:$0xff]  ;;  %v3020_v27 = vpack.c.bf16 %v444_v19, %v440_v18  ;;  %v3024_v32 = vpack.c.bf16 %v446_v22, %v442_v21  ;;  %v105_v19 = vlaneseq }
  0x60   :  { %1960 = vmatmul.mubr.msk.f32.gmra.mrb[4].mxu1 %vm125_vm0, %v81_v63  ;;  %2017 = vmatpush1.bf16.msra.mxu0 %v2988_v0  ;;  %v3016_v23 = vpack.c.bf16 %v447_v16, %v443_v15  ;;  %v453_v25 = vld [vmem:[#allocation3 + $0x168] sm:$0xff]  ;;  %v451_v28 = vld [vmem:[#allocation3 + $0x158] sm:$0xff]  ;;  %v448_v33 = vld [vmem:[#allocation3 + $0x140] sm:$0xff] }
  0x61   :  { %2049 = vmatpush1.bf16.msra.mxu1 %v2992_v3  ;;  %232 = vmatprep.mubr.f32.mxu0 %v2869_v7  ;;  %v455_v31 = vld [vmem:[#allocation3 + $0x178] sm:$0xff]  ;;  %v452_v34 = vld [vmem:[#allocation3 + $0x160] sm:$0xff]  ;;  %v3028_v36 = vpack.c.bf16 %v453_v25, %v449_v24  ;;  %v450_v37 = vld [vmem:[#allocation3 + $0x150] sm:$0xff]  ;;  %v106_v21 = vshrl.u32 %v105_v19, 7 }
  0x62   :  { %345 = vmatprep.mubr.f32.mxu1 %v2869_v7  ;;  %2019 = vmatprep.subr.bf16.mxu0 %v2996_v6  ;;  %v454_v39 = vld [vmem:[#allocation3 + $0x170] sm:$0xff]  ;;  %v3032_v40 = vpack.c.bf16 %v455_v31, %v451_v28  ;;  %v457_v41 = vld [vmem:[#allocation3 + $0x188] sm:$0xff]  ;;  %v3036_v45 = vpack.c.bf16 %v452_v34, %v448_v33  ;;  %v459_v46 = vld [vmem:[#allocation3 + $0x198] sm:$0xff] }
  0x63   :  { %1953 = vmatmul.mubr.msk.f32.gmra.mrb[6].mxu0 %vm125_vm0, %v82_v13  ;;  %2051 = vmatprep.subr.bf16.mxu1 %v3000_v10  ;;  %v461_v43 = vld [vmem:[#allocation3 + $0x1a8] sm:$0xff]  ;;  %v463_v48 = vld [vmem:[#allocation3 + $0x1b8] sm:$0xff]  ;;  %v3040_v49 = vpack.c.bf16 %v454_v39, %v450_v37  ;;  %v456_v51 = vld [vmem:[#allocation3 + $0x180] sm:$0xff]  ;;  %v107_v22 = vsub.s32 0, %v106_v21  ;;  %v111_v25 = vsub.s32 1, %v106_v21  ;;  %v119_v33 = vsub.s32 3, %v106_v21 }
  0x64   :  { %1961 = vmatmul.mubr.msk.f32.gmra.mrb[6].mxu1 %vm125_vm0, %v82_v13  ;;  %2021 = vmatpush1.bf16.msra.mxu0 %v3004_v14  ;;  %v84_v44 = vld [vmem:[#allocation7 + $0x28] sm:$0xff]  ;;  %v460_v52 = vld [vmem:[#allocation3 + $0x1a0] sm:$0xff]  ;;  %v3044_v53 = vpack.c.bf16 %v461_v43, %v457_v41  ;;  %v458_v55 = vld [vmem:[#allocation3 + $0x190] sm:$0xff]  ;;  %v3048_v58 = vpack.c.bf16 %v463_v48, %v459_v46 }
  0x65   :  { %2053 = vmatpush1.bf16.msra.mxu1 %v3008_v17  ;;  %238 = vmatprep.mubr.f32.mxu0 %v2869_v7  ;;  %v462_v56 = vld [vmem:[#allocation3 + $0x1b0] sm:$0xff]  ;;  %v465_v59 = vld [vmem:[#allocation3 + $0x1c8] sm:$0xff]  ;;  %v3052_v63 = vpack.c.bf16 %v460_v52, %v456_v51  ;;  %v467_v1 = vld [vmem:[#allocation3 + $0x1d8] sm:$0xff]  ;;  %v115_v51 = vsub.s32 2, %v106_v21 }
  0x66   :  { %351 = vmatprep.mubr.f32.mxu1 %v2869_v7  ;;  %2023 = vmatprep.subr.bf16.mxu0 %v3012_v20  ;;  %v469_v61 = vld [vmem:[#allocation3 + $0x1e8] sm:$0xff]  ;;  %v85_v62 = vld [vmem:[#allocation7 + $0x30] sm:$0xff]  ;;  %v471_v2 = vld [vmem:[#allocation3 + $0x1f8] sm:$0xff]  ;;  %v3056_v4 = vpack.c.bf16 %v462_v56, %v458_v55 }
  0x67   :  { %1954 = vmatmul.mubr.msk.f32.gmra.mrb[8].mxu0 %vm125_vm0, %v83_v26  ;;  %2055 = vmatprep.subr.bf16.mxu1 %v3016_v23  ;;  %v464_v5 = vld [vmem:[#allocation3 + $0x1c0] sm:$0xff]  ;;  %v3060_v9 = vpack.c.bf16 %v469_v61, %v465_v59  ;;  %v466_v11 = vld [vmem:[#allocation3 + $0x1d0] sm:$0xff]  ;;  %v3064_v13 = vpack.c.bf16 %v471_v2, %v467_v1  ;;  %v86_v15 = vld [vmem:[#allocation7 + $0x38] sm:$0xff] }
  0x68   :  { %1962 = vmatmul.mubr.msk.f32.gmra.mrb[8].mxu1 %vm125_vm0, %v83_v26  ;;  %2025 = vmatpush1.bf16.msra.mxu0 %v3020_v27  ;;  %v468_v8 = vld [vmem:[#allocation3 + $0x1e0] sm:$0xff]  ;;  %v470_v12 = vld [vmem:[#allocation3 + $0x1f0] sm:$0xff] }
  0x69   :  { %2057 = vmatpush1.bf16.msra.mxu1 %v3024_v32  ;;  %244 = vmatprep.mubr.f32.mxu0 %v2869_v7  ;;  %v3068_v16 = vpack.c.bf16 %v468_v8, %v464_v5  ;;  %v3072_v18 = vpack.c.bf16 %v470_v12, %v466_v11  ;;  %v103_v24 = vld [vmem:[#allocation10] sm:$0xf] }
  0x6a   :  { %357 = vmatprep.mubr.f32.mxu1 %v2869_v7  ;;  %2027 = vmatprep.subr.bf16.mxu0 %v3028_v36  ;;  %v3121_v26 = vrot.slane %v103_v24, %v107_v22  ;;  %v3123_v28 = vrot.slane %v103_v24, %v111_v25  ;;  %v3127_v48 = vrot.slane %v103_v24, %v119_v33 }
  0x6b   :  { %1955 = vmatmul.mubr.msk.f32.gmra.mrb[10].mxu0 %vm125_vm0, %v84_v44  ;;  %2059 = vmatprep.subr.bf16.mxu1 %v3032_v40  ;;  %v3130_v55 = vrot.slane %v103_v24, %v115_v51 }
  0x6c   :  { %1963 = vmatmul.mubr.msk.f32.gmra.mrb[10].mxu1 %vm125_vm0, %v84_v44  ;;  %2029 = vmatpush1.bf16.msra.mxu0 %v3036_v45 }
  0x6d   :  { %2061 = vmatpush1.bf16.msra.mxu1 %v3040_v49  ;;  %250 = vmatprep.mubr.f32.mxu0 %v2869_v7 }
  0x6e   :  { %363 = vmatprep.mubr.f32.mxu1 %v2869_v7  ;;  %2031 = vmatprep.subr.bf16.mxu0 %v3044_v53 }
  0x6f   :  { %1956 = vmatmul.mubr.msk.f32.gmra.mrb[12].mxu0 %vm125_vm0, %v85_v62  ;;  %2063 = vmatprep.subr.bf16.mxu1 %v3048_v58 }
  0x70   :  { %1964 = vmatmul.mubr.msk.f32.gmra.mrb[12].mxu1 %vm125_vm0, %v85_v62  ;;  %2033 = vmatpush1.bf16.msra.mxu0 %v3052_v63 }
  0x71   :  { %2065 = vmatpush1.bf16.msra.mxu1 %v3056_v4  ;;  %256 = vmatprep.mubr.f32.mxu0 %v2869_v7 }
  0x72   :  { %369 = vmatprep.mubr.f32.mxu1 %v2869_v7  ;;  %2035 = vmatprep.subr.bf16.mxu0 %v3060_v9 }
  0x73   :  { %1957 = vmatmul.mubr.msk.f32.gmra.mrb[14].mxu0 %vm125_vm0, %v86_v15  ;;  %2067 = vmatprep.subr.bf16.mxu1 %v3064_v13 }
  0x74   :  { %1965 = vmatmul.mubr.msk.f32.gmra.mrb[14].mxu1 %vm125_vm0, %v86_v15  ;;  %2037 = vmatpush1.bf16.msra.mxu0 %v3068_v16 }
  0x75   :  { %2069 = vmatpush1.bf16.msra.mxu1 %v3072_v18  ;;  %545 = vmatprep.mubr.f32.mxu0 %v2869_v7 }
  0x76   :  { %616 = vmatprep.mubr.f32.mxu1 %v2869_v7  ;;  %2071 = vmatprep.subr.bf16.mxu0 %v2955_v29 }
  0x77   :  { %546 = vmatmul.mubr.f32.vlgmr.msra.gmra.mrb[0].mxu0 %v2869_v7  ;;  %2103 = vmatprep.subr.bf16.mxu1 %v2957_v30 }
  0x78   :  { %617 = vmatmul.mubr.f32.vlgmr.msra.gmra.mrb[0].mxu1 %v2869_v7  ;;  %2073 = vmatpush1.bf16.msra.mxu0 %v2959_v35 }
  0x79   :  { %2105 = vmatpush1.bf16.msra.mxu1 %v2962_v38  ;;  %2075 = vmatprep.subr.bf16.mxu0 %v2965_v42 }
  0x7a   :  { %2107 = vmatprep.subr.bf16.mxu1 %v2968_v47  ;;  %723 = vmatprep.mubr.f32.mxu0 %v2869_v7 }
  0x7b   :  { %794 = vmatprep.mubr.f32.mxu1 %v2869_v7 }
  0x7c   :  { %2077 = vmatpush1.bf16.msra.mxu0 %v2972_v50 }
  0x7d   :  { %2109 = vmatpush1.bf16.msra.mxu1 %v2976_v54  ;;  %2079 = vmatprep.subr.bf16.mxu0 %v2980_v57 }
  0x7e   :  { %2111 = vmatprep.subr.bf16.mxu1 %v2984_v60 }
  0x80   :  { %2081 = vmatpush1.bf16.msra.mxu0 %v2988_v0 }
  0x81   :  { %2113 = vmatpush1.bf16.msra.mxu1 %v2992_v3  ;;  %2083 = vmatprep.subr.bf16.mxu0 %v2996_v6 }
  0x82   :  { %2115 = vmatprep.subr.bf16.mxu1 %v3000_v10 }
  0x84   :  { %2085 = vmatpush1.bf16.msra.mxu0 %v3004_v14 }
  0x85   :  { %2117 = vmatpush1.bf16.msra.mxu1 %v3008_v17  ;;  %2087 = vmatprep.subr.bf16.mxu0 %v3012_v20 }
  0x86   :  { %2119 = vmatprep.subr.bf16.mxu1 %v3016_v23 }
  0x88   :  { %2089 = vmatpush1.bf16.msra.mxu0 %v3020_v27 }
  0x89   :  { %2121 = vmatpush1.bf16.msra.mxu1 %v3024_v32  ;;  %2091 = vmatprep.subr.bf16.mxu0 %v3028_v36 }
  0x8a   :  { %2123 = vmatprep.subr.bf16.mxu1 %v3032_v40 }
  0x8c   :  { %2093 = vmatpush1.bf16.msra.mxu0 %v3036_v45 }
  0x8d   :  { %2125 = vmatpush1.bf16.msra.mxu1 %v3040_v49  ;;  %2095 = vmatprep.subr.bf16.mxu0 %v3044_v53 }
  0x8e   :  { %2127 = vmatprep.subr.bf16.mxu1 %v3048_v58 }
  0x90   :  { %2097 = vmatpush1.bf16.msra.mxu0 %v3052_v63 }
  0x91   :  { %2129 = vmatpush1.bf16.msra.mxu1 %v3056_v4  ;;  %2099 = vmatprep.subr.bf16.mxu0 %v3060_v9 }
  0x92   :  { %2131 = vmatprep.subr.bf16.mxu1 %v3064_v13 }
  0x94   :  { %2101 = vmatpush1.bf16.msra.mxu0 %v3068_v16 }
  0x95   :  { %2133 = vmatpush1.bf16.msra.mxu1 %v3072_v18  ;;  %2135 = vmatprep.subr.bf16.mxu0 %v2955_v29 }
  0x96   :  { %2167 = vmatprep.subr.bf16.mxu1 %v2957_v30 }
 0x14a   :  { %v547_v31 = vpop.f32.mrb[0].mxu0 }
 0x14b   :  { %v2518_v34 = vadd.f32 %v547_v31, %v3121_v26  ;;  %v618_v37 = vpop.f32.mrb[0].mxu1  ;;  %v549_v39 = vpop.f32.mrb[1].mxu0 }
 0x14c   :  { %v2519_v41 = vadd.f32 %v549_v39, %v3123_v28  ;;  %v620_v43 = vpop.f32.mrb[1].mxu1  ;;  %v2534_v59 = vadd.f32 %v618_v37, %v3130_v55 }
 0x14d   :  { %v1966_v44 = vmul.f32 -1.442695, %v2518_v34  ;;  %v2535_v52 = vadd.f32 %v620_v43, %v3127_v48 }
 0x14e   :  { %v1967_v46 = vmul.f32 -1.442695, %v2519_v41 }
 0x14f   :  { %2591 = vpow2.f32 %v1966_v44  ;;  %v1968_v56 = vmul.f32 -1.442695, %v2535_v52 }
 0x150   :  { %2593 = vpow2.f32 %v1967_v46 }
 0x151   :  { %2595 = vpow2.f32 %v1968_v56 }
 0x152   :  { %2597 = vtanh.f32 %v2534_v59 }
 0x159   :  { %v2592_v61 = vpop.eup %2591 }
 0x15a   :  { %v2594_v62 = vpop.eup %2593  ;;  %v633_v1 = vadd.f32 1.0, %v2592_v61 }
 0x15b   :  { %v634_v2 = vadd.f32 1.0, %v2594_v62  ;;  %v2596_v5 = vpop.eup %2595 }
 0x15c   :  { %2599 = vrcp.f32 %v633_v1  ;;  %v2598_v8 = vpop.eup %2597  ;;  %v643_v19 = vadd.f32 1.0, %v2596_v5 }
 0x15d   :  { %2601 = vrcp.f32 %v634_v2 }
 0x15e   :  { %2603 = vrcp.f32 %v643_v19 }
 0x166   :  { %v2600_v11 = vpop.eup %2599 }
 0x167   :  { %v2602_v12 = vpop.eup %2601  ;;  %v647_v15 = vmul.f32 %v2600_v11, %v2598_v8 }
 0x168   :  { %v646_v21 = vmul.f32 0.0, %v2602_v12  ;;  %v2604_v24 = vpop.eup %2603 }
 0x16a   :  { %v3133_v22 = vadd.f32 %v647_v15, %v646_v21 }
 0x16c   :  { %2605 = vtanh.f32 %v3133_v22 }
 0x176   :  { %v2606_v25 = vpop.eup %2605 }
 0x177   :  { %v650_v31 = vmul.f32 %v2606_v25, %v2604_v24 }
 0x179   :  { %651 = vst [vmem:[#allocation12] sm:$0xff] %v650_v31  ;;  %724 = vmatmul.mubr.f32.vlgmr.msra.gmra.mrb[2].mxu0 %v650_v31  ;;  %795 = vmatmul.mubr.f32.vlgmr.msra.gmra.mrb[2].mxu1 %v650_v31 }
 0x17a   :  { %2137 = vmatpush1.bf16.msra.mxu0 %v2959_v35  ;;  %2169 = vmatpush1.bf16.msra.mxu1 %v2962_v38 }
 0x17b   :  { %2139 = vmatprep.subr.bf16.mxu0 %v2965_v42  ;;  %2171 = vmatprep.subr.bf16.mxu1 %v2968_v47 }
 0x17c   :  { %902 = vmatprep.mubr.f32.mxu0 %v2869_v7  ;;  %973 = vmatprep.mubr.f32.mxu1 %v2869_v7 }
 0x17e   :  { %2141 = vmatpush1.bf16.msra.mxu0 %v2972_v50  ;;  %2173 = vmatpush1.bf16.msra.mxu1 %v2976_v54 }
 0x17f   :  { %2143 = vmatprep.subr.bf16.mxu0 %v2980_v57  ;;  %2175 = vmatprep.subr.bf16.mxu1 %v2984_v60 }
 0x182   :  { %2145 = vmatpush1.bf16.msra.mxu0 %v2988_v0  ;;  %2177 = vmatpush1.bf16.msra.mxu1 %v2992_v3 }
 0x183   :  { %2147 = vmatprep.subr.bf16.mxu0 %v2996_v6  ;;  %2179 = vmatprep.subr.bf16.mxu1 %v3000_v10 }
 0x186   :  { %2149 = vmatpush1.bf16.msra.mxu0 %v3004_v14  ;;  %2181 = vmatpush1.bf16.msra.mxu1 %v3008_v17 }
 0x187   :  { %2151 = vmatprep.subr.bf16.mxu0 %v3012_v20  ;;  %2183 = vmatprep.subr.bf16.mxu1 %v3016_v23 }
 0x18a   :  { %2153 = vmatpush1.bf16.msra.mxu0 %v3020_v27  ;;  %2185 = vmatpush1.bf16.msra.mxu1 %v3024_v32 }
 0x18b   :  { %2155 = vmatprep.subr.bf16.mxu0 %v3028_v36  ;;  %2187 = vmatprep.subr.bf16.mxu1 %v3032_v40 }
 0x18e   :  { %2157 = vmatpush1.bf16.msra.mxu0 %v3036_v45  ;;  %2189 = vmatpush1.bf16.msra.mxu1 %v3040_v49 }
 0x18f   :  { %2159 = vmatprep.subr.bf16.mxu0 %v3044_v53  ;;  %2191 = vmatprep.subr.bf16.mxu1 %v3048_v58 }
 0x192   :  { %2161 = vmatpush1.bf16.msra.mxu0 %v3052_v63  ;;  %2193 = vmatpush1.bf16.msra.mxu1 %v3056_v4 }
 0x193   :  { %2163 = vmatprep.subr.bf16.mxu0 %v3060_v9  ;;  %2195 = vmatprep.subr.bf16.mxu1 %v3064_v13 }
 0x196   :  { %2165 = vmatpush1.bf16.msra.mxu0 %v3068_v16  ;;  %2197 = vmatpush1.bf16.msra.mxu1 %v3072_v18 }
 0x197   :  { %2199 = vmatprep.subr.bf16.mxu0 %v2955_v29  ;;  %2231 = vmatprep.subr.bf16.mxu1 %v2957_v30 }
 0x24c   :  { %v725_v33 = vpop.f32.mrb[2].mxu0  ;;  %v796_v34 = vpop.f32.mrb[2].mxu1 }
 0x24d   :  { %v2520_v37 = vadd.f32 %v725_v33, %v3121_v26  ;;  %v727_v39 = vpop.f32.mrb[3].mxu0  ;;  %v798_v41 = vpop.f32.mrb[3].mxu1  ;;  %v2536_v56 = vadd.f32 %v796_v34, %v3130_v55 }
 0x24e   :  { %v2521_v43 = vadd.f32 %v727_v39, %v3123_v28  ;;  %v2537_v51 = vadd.f32 %v798_v41, %v3127_v48 }
 0x24f   :  { %v1969_v44 = vmul.f32 -1.442695, %v2520_v37 }
 0x250   :  { %v1970_v46 = vmul.f32 -1.442695, %v2521_v43  ;;  %v1971_v52 = vmul.f32 -1.442695, %v2537_v51 }
 0x251   :  { %2607 = vpow2.f32 %v1969_v44 }
 0x252   :  { %2609 = vpow2.f32 %v1970_v46 }
 0x253   :  { %2611 = vpow2.f32 %v1971_v52 }
 0x254   :  { %2613 = vtanh.f32 %v2536_v56 }
 0x25b   :  { %v2608_v59 = vpop.eup %2607 }
 0x25c   :  { %v2610_v61 = vpop.eup %2609  ;;  %v811_v62 = vadd.f32 1.0, %v2608_v59 }
 0x25d   :  { %v812_v1 = vadd.f32 1.0, %v2610_v61  ;;  %v2612_v2 = vpop.eup %2611 }
 0x25e   :  { %2615 = vrcp.f32 %v811_v62  ;;  %v2614_v5 = vpop.eup %2613  ;;  %v821_v15 = vadd.f32 1.0, %v2612_v2 }
 0x25f   :  { %2617 = vrcp.f32 %v812_v1 }
 0x260   :  { %2619 = vrcp.f32 %v821_v15 }
 0x268   :  { %v2616_v8 = vpop.eup %2615 }
 0x269   :  { %v2618_v11 = vpop.eup %2617  ;;  %v825_v12 = vmul.f32 %v2616_v8, %v2614_v5 }
 0x26a   :  { %v824_v19 = vmul.f32 %v2618_v11, %v3133_v22  ;;  %v2620_v24 = vpop.eup %2619 }
 0x26c   :  { %v3175_v21 = vadd.f32 %v825_v12, %v824_v19 }
 0x26e   :  { %2621 = vtanh.f32 %v3175_v21 }
 0x278   :  { %v2622_v25 = vpop.eup %2621 }
 0x279   :  { %v828_v31 = vmul.f32 %v2622_v25, %v2620_v24 }
 0x27b   :  { %830 = vst [vmem:[#allocation12 + $0x8] sm:$0xff] %v828_v31  ;;  %903 = vmatmul.mubr.f32.vlgmr.msra.gmra.mrb[4].mxu0 %v828_v31  ;;  %974 = vmatmul.mubr.f32.vlgmr.msra.gmra.mrb[4].mxu1 %v828_v31 }
 0x27c   :  { %2201 = vmatpush1.bf16.msra.mxu0 %v2959_v35  ;;  %2233 = vmatpush1.bf16.msra.mxu1 %v2962_v38 }
 0x27d   :  { %2203 = vmatprep.subr.bf16.mxu0 %v2965_v42  ;;  %2235 = vmatprep.subr.bf16.mxu1 %v2968_v47 }
 0x27e   :  { %1081 = vmatprep.mubr.f32.mxu0 %v2869_v7  ;;  %1152 = vmatprep.mubr.f32.mxu1 %v2869_v7 }
 0x280   :  { %2205 = vmatpush1.bf16.msra.mxu0 %v2972_v50  ;;  %2237 = vmatpush1.bf16.msra.mxu1 %v2976_v54 }
 0x281   :  { %2207 = vmatprep.subr.bf16.mxu0 %v2980_v57  ;;  %2239 = vmatprep.subr.bf16.mxu1 %v2984_v60 }
 0x284   :  { %2209 = vmatpush1.bf16.msra.mxu0 %v2988_v0  ;;  %2241 = vmatpush1.bf16.msra.mxu1 %v2992_v3 }
 0x285   :  { %2211 = vmatprep.subr.bf16.mxu0 %v2996_v6  ;;  %2243 = vmatprep.subr.bf16.mxu1 %v3000_v10 }
 0x288   :  { %2213 = vmatpush1.bf16.msra.mxu0 %v3004_v14  ;;  %2245 = vmatpush1.bf16.msra.mxu1 %v3008_v17 }
 0x289   :  { %2215 = vmatprep.subr.bf16.mxu0 %v3012_v20  ;;  %2247 = vmatprep.subr.bf16.mxu1 %v3016_v23 }
 0x28c   :  { %2217 = vmatpush1.bf16.msra.mxu0 %v3020_v27  ;;  %2249 = vmatpush1.bf16.msra.mxu1 %v3024_v32 }
 0x28d   :  { %2219 = vmatprep.subr.bf16.mxu0 %v3028_v36  ;;  %2251 = vmatprep.subr.bf16.mxu1 %v3032_v40 }
 0x290   :  { %2221 = vmatpush1.bf16.msra.mxu0 %v3036_v45  ;;  %2253 = vmatpush1.bf16.msra.mxu1 %v3040_v49 }
 0x291   :  { %2223 = vmatprep.subr.bf16.mxu0 %v3044_v53  ;;  %2255 = vmatprep.subr.bf16.mxu1 %v3048_v58 }
 0x294   :  { %2225 = vmatpush1.bf16.msra.mxu0 %v3052_v63  ;;  %2257 = vmatpush1.bf16.msra.mxu1 %v3056_v4 }
 0x295   :  { %2227 = vmatprep.subr.bf16.mxu0 %v3060_v9  ;;  %2259 = vmatprep.subr.bf16.mxu1 %v3064_v13 }
 0x298   :  { %2229 = vmatpush1.bf16.msra.mxu0 %v3068_v16  ;;  %2261 = vmatpush1.bf16.msra.mxu1 %v3072_v18 }
 0x299   :  { %2263 = vmatprep.subr.bf16.mxu0 %v2955_v29  ;;  %2295 = vmatprep.subr.bf16.mxu1 %v2957_v30 }
 0x34e   :  { %v904_v22 = vpop.f32.mrb[4].mxu0  ;;  %v975_v33 = vpop.f32.mrb[4].mxu1 }
 0x34f   :  { %v2522_v34 = vadd.f32 %v904_v22, %v3121_v26  ;;  %v906_v37 = vpop.f32.mrb[5].mxu0  ;;  %v977_v39 = vpop.f32.mrb[5].mxu1  ;;  %v2538_v52 = vadd.f32 %v975_v33, %v3130_v55 }
 0x350   :  { %v2523_v41 = vadd.f32 %v906_v37, %v3123_v28  ;;  %v2539_v46 = vadd.f32 %v977_v39, %v3127_v48 }
 0x351   :  { %v1972_v43 = vmul.f32 -1.442695, %v2522_v34 }
 0x352   :  { %v1973_v44 = vmul.f32 -1.442695, %v2523_v41  ;;  %v1974_v51 = vmul.f32 -1.442695, %v2539_v46 }
 0x353   :  { %2623 = vpow2.f32 %v1972_v43 }
 0x354   :  { %2625 = vpow2.f32 %v1973_v44 }
 0x355   :  { %2627 = vpow2.f32 %v1974_v51 }
 0x356   :  { %2629 = vtanh.f32 %v2538_v52 }
 0x35d   :  { %v2624_v56 = vpop.eup %2623 }
 0x35e   :  { %v2626_v59 = vpop.eup %2625  ;;  %v990_v61 = vadd.f32 1.0, %v2624_v56 }
 0x35f   :  { %v991_v62 = vadd.f32 1.0, %v2626_v59  ;;  %v2628_v1 = vpop.eup %2627 }
 0x360   :  { %2631 = vrcp.f32 %v990_v61  ;;  %v2630_v2 = vpop.eup %2629  ;;  %v1000_v12 = vadd.f32 1.0, %v2628_v1 }
 0x361   :  { %2633 = vrcp.f32 %v991_v62 }
 0x362   :  { %2635 = vrcp.f32 %v1000_v12 }
 0x36a   :  { %v2632_v5 = vpop.eup %2631 }
 0x36b   :  { %v2634_v8 = vpop.eup %2633  ;;  %v1004_v11 = vmul.f32 %v2632_v5, %v2630_v2 }
 0x36c   :  { %v1003_v15 = vmul.f32 %v2634_v8, %v3175_v21  ;;  %v2636_v24 = vpop.eup %2635 }
 0x36e   :  { %v3217_v19 = vadd.f32 %v1004_v11, %v1003_v15 }
 0x370   :  { %2637 = vtanh.f32 %v3217_v19 }
 0x37a   :  { %v2638_v25 = vpop.eup %2637 }
 0x37b   :  { %v1007_v31 = vmul.f32 %v2638_v25, %v2636_v24 }
 0x37d   :  { %1009 = vst [vmem:[#allocation12 + $0x10] sm:$0xff] %v1007_v31  ;;  %1082 = vmatmul.mubr.f32.vlgmr.msra.gmra.mrb[6].mxu0 %v1007_v31  ;;  %1153 = vmatmul.mubr.f32.vlgmr.msra.gmra.mrb[6].mxu1 %v1007_v31 }
 0x37e   :  { %2265 = vmatpush1.bf16.msra.mxu0 %v2959_v35  ;;  %2297 = vmatpush1.bf16.msra.mxu1 %v2962_v38 }
 0x37f   :  { %2267 = vmatprep.subr.bf16.mxu0 %v2965_v42  ;;  %2299 = vmatprep.subr.bf16.mxu1 %v2968_v47 }
 0x380   :  { %1260 = vmatprep.mubr.f32.mxu0 %v2869_v7  ;;  %1331 = vmatprep.mubr.f32.mxu1 %v2869_v7 }
 0x382   :  { %2269 = vmatpush1.bf16.msra.mxu0 %v2972_v50  ;;  %2301 = vmatpush1.bf16.msra.mxu1 %v2976_v54 }
 0x383   :  { %2271 = vmatprep.subr.bf16.mxu0 %v2980_v57  ;;  %2303 = vmatprep.subr.bf16.mxu1 %v2984_v60 }
 0x386   :  { %2273 = vmatpush1.bf16.msra.mxu0 %v2988_v0  ;;  %2305 = vmatpush1.bf16.msra.mxu1 %v2992_v3 }
 0x387   :  { %2275 = vmatprep.subr.bf16.mxu0 %v2996_v6  ;;  %2307 = vmatprep.subr.bf16.mxu1 %v3000_v10 }
 0x38a   :  { %2277 = vmatpush1.bf16.msra.mxu0 %v3004_v14  ;;  %2309 = vmatpush1.bf16.msra.mxu1 %v3008_v17 }
 0x38b   :  { %2279 = vmatprep.subr.bf16.mxu0 %v3012_v20  ;;  %2311 = vmatprep.subr.bf16.mxu1 %v3016_v23 }
 0x38e   :  { %2281 = vmatpush1.bf16.msra.mxu0 %v3020_v27  ;;  %2313 = vmatpush1.bf16.msra.mxu1 %v3024_v32 }
 0x38f   :  { %2283 = vmatprep.subr.bf16.mxu0 %v3028_v36  ;;  %2315 = vmatprep.subr.bf16.mxu1 %v3032_v40 }
 0x392   :  { %2285 = vmatpush1.bf16.msra.mxu0 %v3036_v45  ;;  %2317 = vmatpush1.bf16.msra.mxu1 %v3040_v49 }
 0x393   :  { %2287 = vmatprep.subr.bf16.mxu0 %v3044_v53  ;;  %2319 = vmatprep.subr.bf16.mxu1 %v3048_v58 }
 0x396   :  { %2289 = vmatpush1.bf16.msra.mxu0 %v3052_v63  ;;  %2321 = vmatpush1.bf16.msra.mxu1 %v3056_v4 }
 0x397   :  { %2291 = vmatprep.subr.bf16.mxu0 %v3060_v9  ;;  %2323 = vmatprep.subr.bf16.mxu1 %v3064_v13 }
 0x39a   :  { %2293 = vmatpush1.bf16.msra.mxu0 %v3068_v16  ;;  %2325 = vmatpush1.bf16.msra.mxu1 %v3072_v18 }
 0x39b   :  { %2327 = vmatprep.subr.bf16.mxu0 %v2955_v29  ;;  %2359 = vmatprep.subr.bf16.mxu1 %v2957_v30 }
 0x450   :  { %v1083_v21 = vpop.f32.mrb[6].mxu0  ;;  %v1154_v22 = vpop.f32.mrb[6].mxu1 }
 0x451   :  { %v2524_v33 = vadd.f32 %v1083_v21, %v3121_v26  ;;  %v1085_v34 = vpop.f32.mrb[7].mxu0  ;;  %v1156_v37 = vpop.f32.mrb[7].mxu1  ;;  %v2540_v51 = vadd.f32 %v1154_v22, %v3130_v55 }
 0x452   :  { %v2525_v39 = vadd.f32 %v1085_v34, %v3123_v28  ;;  %v2541_v44 = vadd.f32 %v1156_v37, %v3127_v48 }
 0x453   :  { %v1975_v41 = vmul.f32 -1.442695, %v2524_v33 }
 0x454   :  { %v1976_v43 = vmul.f32 -1.442695, %v2525_v39  ;;  %v1977_v46 = vmul.f32 -1.442695, %v2541_v44 }
 0x455   :  { %2639 = vpow2.f32 %v1975_v41 }
 0x456   :  { %2641 = vpow2.f32 %v1976_v43 }
 0x457   :  { %2643 = vpow2.f32 %v1977_v46 }
 0x458   :  { %2645 = vtanh.f32 %v2540_v51 }
 0x45f   :  { %v2640_v52 = vpop.eup %2639 }
 0x460   :  { %v2642_v56 = vpop.eup %2641  ;;  %v1169_v59 = vadd.f32 1.0, %v2640_v52 }
 0x461   :  { %v1170_v61 = vadd.f32 1.0, %v2642_v56  ;;  %v2644_v62 = vpop.eup %2643 }
 0x462   :  { %2647 = vrcp.f32 %v1169_v59  ;;  %v2646_v1 = vpop.eup %2645  ;;  %v1179_v11 = vadd.f32 1.0, %v2644_v62 }
 0x463   :  { %2649 = vrcp.f32 %v1170_v61 }
 0x464   :  { %2651 = vrcp.f32 %v1179_v11 }
 0x46c   :  { %v2648_v2 = vpop.eup %2647 }
 0x46d   :  { %v2650_v5 = vpop.eup %2649  ;;  %v1183_v8 = vmul.f32 %v2648_v2, %v2646_v1 }
 0x46e   :  { %v1182_v12 = vmul.f32 %v2650_v5, %v3217_v19  ;;  %v2652_v24 = vpop.eup %2651 }
 0x470   :  { %v3259_v15 = vadd.f32 %v1183_v8, %v1182_v12 }
 0x472   :  { %2653 = vtanh.f32 %v3259_v15 }
 0x47c   :  { %v2654_v25 = vpop.eup %2653 }
 0x47d   :  { %v1186_v31 = vmul.f32 %v2654_v25, %v2652_v24 }
 0x47f   :  { %1188 = vst [vmem:[#allocation12 + $0x18] sm:$0xff] %v1186_v31  ;;  %1261 = vmatmul.mubr.f32.vlgmr.msra.gmra.mrb[8].mxu0 %v1186_v31  ;;  %1332 = vmatmul.mubr.f32.vlgmr.msra.gmra.mrb[8].mxu1 %v1186_v31 }
 0x480   :  { %2329 = vmatpush1.bf16.msra.mxu0 %v2959_v35  ;;  %2361 = vmatpush1.bf16.msra.mxu1 %v2962_v38 }
 0x481   :  { %2331 = vmatprep.subr.bf16.mxu0 %v2965_v42  ;;  %2363 = vmatprep.subr.bf16.mxu1 %v2968_v47 }
 0x482   :  { %1439 = vmatprep.mubr.f32.mxu0 %v2869_v7  ;;  %1510 = vmatprep.mubr.f32.mxu1 %v2869_v7 }
 0x484   :  { %2333 = vmatpush1.bf16.msra.mxu0 %v2972_v50  ;;  %2365 = vmatpush1.bf16.msra.mxu1 %v2976_v54 }
 0x485   :  { %2335 = vmatprep.subr.bf16.mxu0 %v2980_v57  ;;  %2367 = vmatprep.subr.bf16.mxu1 %v2984_v60 }
 0x488   :  { %2337 = vmatpush1.bf16.msra.mxu0 %v2988_v0  ;;  %2369 = vmatpush1.bf16.msra.mxu1 %v2992_v3 }
 0x489   :  { %2339 = vmatprep.subr.bf16.mxu0 %v2996_v6  ;;  %2371 = vmatprep.subr.bf16.mxu1 %v3000_v10 }
 0x48c   :  { %2341 = vmatpush1.bf16.msra.mxu0 %v3004_v14  ;;  %2373 = vmatpush1.bf16.msra.mxu1 %v3008_v17 }
 0x48d   :  { %2343 = vmatprep.subr.bf16.mxu0 %v3012_v20  ;;  %2375 = vmatprep.subr.bf16.mxu1 %v3016_v23 }
 0x490   :  { %2345 = vmatpush1.bf16.msra.mxu0 %v3020_v27  ;;  %2377 = vmatpush1.bf16.msra.mxu1 %v3024_v32 }
 0x491   :  { %2347 = vmatprep.subr.bf16.mxu0 %v3028_v36  ;;  %2379 = vmatprep.subr.bf16.mxu1 %v3032_v40 }
 0x494   :  { %2349 = vmatpush1.bf16.msra.mxu0 %v3036_v45  ;;  %2381 = vmatpush1.bf16.msra.mxu1 %v3040_v49 }
 0x495   :  { %2351 = vmatprep.subr.bf16.mxu0 %v3044_v53  ;;  %2383 = vmatprep.subr.bf16.mxu1 %v3048_v58 }
 0x498   :  { %2353 = vmatpush1.bf16.msra.mxu0 %v3052_v63  ;;  %2385 = vmatpush1.bf16.msra.mxu1 %v3056_v4 }
 0x499   :  { %2355 = vmatprep.subr.bf16.mxu0 %v3060_v9  ;;  %2387 = vmatprep.subr.bf16.mxu1 %v3064_v13 }
 0x49c   :  { %2357 = vmatpush1.bf16.msra.mxu0 %v3068_v16  ;;  %2389 = vmatpush1.bf16.msra.mxu1 %v3072_v18 }
 0x49d   :  { %2391 = vmatprep.subr.bf16.mxu0 %v2955_v29  ;;  %2423 = vmatprep.subr.bf16.mxu1 %v2957_v30 }
 0x552   :  { %v1262_v19 = vpop.f32.mrb[8].mxu0  ;;  %v1333_v21 = vpop.f32.mrb[8].mxu1 }
 0x553   :  { %v2526_v22 = vadd.f32 %v1262_v19, %v3121_v26  ;;  %v1264_v33 = vpop.f32.mrb[9].mxu0  ;;  %v1335_v34 = vpop.f32.mrb[9].mxu1  ;;  %v2542_v46 = vadd.f32 %v1333_v21, %v3130_v55 }
 0x554   :  { %v2527_v37 = vadd.f32 %v1264_v33, %v3123_v28  ;;  %v2543_v43 = vadd.f32 %v1335_v34, %v3127_v48 }
 0x555   :  { %v1978_v39 = vmul.f32 -1.442695, %v2526_v22 }
 0x556   :  { %v1979_v41 = vmul.f32 -1.442695, %v2527_v37  ;;  %v1980_v44 = vmul.f32 -1.442695, %v2543_v43 }
 0x557   :  { %2655 = vpow2.f32 %v1978_v39 }
 0x558   :  { %2657 = vpow2.f32 %v1979_v41 }
 0x559   :  { %2659 = vpow2.f32 %v1980_v44 }
 0x55a   :  { %2661 = vtanh.f32 %v2542_v46 }
 0x561   :  { %v2656_v51 = vpop.eup %2655 }
 0x562   :  { %v2658_v52 = vpop.eup %2657  ;;  %v1348_v56 = vadd.f32 1.0, %v2656_v51 }
 0x563   :  { %v1349_v59 = vadd.f32 1.0, %v2658_v52  ;;  %v2660_v61 = vpop.eup %2659 }
 0x564   :  { %2663 = vrcp.f32 %v1348_v56  ;;  %v2662_v62 = vpop.eup %2661  ;;  %v1358_v8 = vadd.f32 1.0, %v2660_v61 }
 0x565   :  { %2665 = vrcp.f32 %v1349_v59 }
 0x566   :  { %2667 = vrcp.f32 %v1358_v8 }
 0x56e   :  { %v2664_v1 = vpop.eup %2663 }
 0x56f   :  { %v2666_v2 = vpop.eup %2665  ;;  %v1362_v5 = vmul.f32 %v2664_v1, %v2662_v62 }
 0x570   :  { %v1361_v11 = vmul.f32 %v2666_v2, %v3259_v15  ;;  %v2668_v24 = vpop.eup %2667 }
 0x572   :  { %v3301_v12 = vadd.f32 %v1362_v5, %v1361_v11 }
 0x574   :  { %2669 = vtanh.f32 %v3301_v12 }
 0x57e   :  { %v2670_v25 = vpop.eup %2669 }
 0x57f   :  { %v1365_v31 = vmul.f32 %v2670_v25, %v2668_v24 }
 0x581   :  { %1367 = vst [vmem:[#allocation12 + $0x20] sm:$0xff] %v1365_v31  ;;  %1440 = vmatmul.mubr.f32.vlgmr.msra.gmra.mrb[10].mxu0 %v1365_v31  ;;  %1511 = vmatmul.mubr.f32.vlgmr.msra.gmra.mrb[10].mxu1 %v1365_v31 }
 0x582   :  { %2393 = vmatpush1.bf16.msra.mxu0 %v2959_v35  ;;  %2425 = vmatpush1.bf16.msra.mxu1 %v2962_v38 }
 0x583   :  { %2395 = vmatprep.subr.bf16.mxu0 %v2965_v42  ;;  %2427 = vmatprep.subr.bf16.mxu1 %v2968_v47 }
 0x584   :  { %1618 = vmatprep.mubr.f32.mxu0 %v2869_v7  ;;  %1689 = vmatprep.mubr.f32.mxu1 %v2869_v7 }
 0x586   :  { %2397 = vmatpush1.bf16.msra.mxu0 %v2972_v50  ;;  %2429 = vmatpush1.bf16.msra.mxu1 %v2976_v54 }
 0x587   :  { %2399 = vmatprep.subr.bf16.mxu0 %v2980_v57  ;;  %2431 = vmatprep.subr.bf16.mxu1 %v2984_v60 }
 0x58a   :  { %2401 = vmatpush1.bf16.msra.mxu0 %v2988_v0  ;;  %2433 = vmatpush1.bf16.msra.mxu1 %v2992_v3 }
 0x58b   :  { %2403 = vmatprep.subr.bf16.mxu0 %v2996_v6  ;;  %2435 = vmatprep.subr.bf16.mxu1 %v3000_v10 }
 0x58e   :  { %2405 = vmatpush1.bf16.msra.mxu0 %v3004_v14  ;;  %2437 = vmatpush1.bf16.msra.mxu1 %v3008_v17 }
 0x58f   :  { %2407 = vmatprep.subr.bf16.mxu0 %v3012_v20  ;;  %2439 = vmatprep.subr.bf16.mxu1 %v3016_v23 }
 0x592   :  { %2409 = vmatpush1.bf16.msra.mxu0 %v3020_v27  ;;  %2441 = vmatpush1.bf16.msra.mxu1 %v3024_v32 }
 0x593   :  { %2411 = vmatprep.subr.bf16.mxu0 %v3028_v36  ;;  %2443 = vmatprep.subr.bf16.mxu1 %v3032_v40 }
 0x596   :  { %2413 = vmatpush1.bf16.msra.mxu0 %v3036_v45  ;;  %2445 = vmatpush1.bf16.msra.mxu1 %v3040_v49 }
 0x597   :  { %2415 = vmatprep.subr.bf16.mxu0 %v3044_v53  ;;  %2447 = vmatprep.subr.bf16.mxu1 %v3048_v58 }
 0x59a   :  { %2417 = vmatpush1.bf16.msra.mxu0 %v3052_v63  ;;  %2449 = vmatpush1.bf16.msra.mxu1 %v3056_v4 }
 0x59b   :  { %2419 = vmatprep.subr.bf16.mxu0 %v3060_v9  ;;  %2451 = vmatprep.subr.bf16.mxu1 %v3064_v13 }
 0x59e   :  { %2421 = vmatpush1.bf16.msra.mxu0 %v3068_v16  ;;  %2453 = vmatpush1.bf16.msra.mxu1 %v3072_v18 }
 0x59f   :  { %2455 = vmatprep.subr.bf16.mxu0 %v2955_v29  ;;  %2487 = vmatprep.subr.bf16.mxu1 %v2957_v30 }
 0x654   :  { %v1441_v15 = vpop.f32.mrb[10].mxu0  ;;  %v1512_v19 = vpop.f32.mrb[10].mxu1 }
 0x655   :  { %v2528_v21 = vadd.f32 %v1441_v15, %v3121_v26  ;;  %v1443_v22 = vpop.f32.mrb[11].mxu0  ;;  %v1514_v33 = vpop.f32.mrb[11].mxu1  ;;  %v2544_v44 = vadd.f32 %v1512_v19, %v3130_v55 }
 0x656   :  { %v2529_v34 = vadd.f32 %v1443_v22, %v3123_v28  ;;  %v2545_v41 = vadd.f32 %v1514_v33, %v3127_v48 }
 0x657   :  { %v1981_v37 = vmul.f32 -1.442695, %v2528_v21 }
 0x658   :  { %v1982_v39 = vmul.f32 -1.442695, %v2529_v34  ;;  %v1983_v43 = vmul.f32 -1.442695, %v2545_v41 }
 0x659   :  { %2671 = vpow2.f32 %v1981_v37 }
 0x65a   :  { %2673 = vpow2.f32 %v1982_v39 }
 0x65b   :  { %2675 = vpow2.f32 %v1983_v43 }
 0x65c   :  { %2677 = vtanh.f32 %v2544_v44 }
 0x663   :  { %v2672_v29 = vpop.eup %2671 }
 0x664   :  { %v2674_v46 = vpop.eup %2673  ;;  %v1527_v30 = vadd.f32 1.0, %v2672_v29 }
 0x665   :  { %v1528_v51 = vadd.f32 1.0, %v2674_v46  ;;  %v2676_v52 = vpop.eup %2675 }
 0x666   :  { %2679 = vrcp.f32 %v1527_v30  ;;  %v2678_v56 = vpop.eup %2677  ;;  %v1537_v1 = vadd.f32 1.0, %v2676_v52 }
 0x667   :  { %2681 = vrcp.f32 %v1528_v51 }
 0x668   :  { %2683 = vrcp.f32 %v1537_v1 }
 0x670   :  { %v2680_v59 = vpop.eup %2679 }
 0x671   :  { %v2682_v61 = vpop.eup %2681  ;;  %v1541_v62 = vmul.f32 %v2680_v59, %v2678_v56 }
 0x672   :  { %v1540_v2 = vmul.f32 %v2682_v61, %v3301_v12  ;;  %v2684_v8 = vpop.eup %2683 }
 0x674   :  { %v3343_v5 = vadd.f32 %v1541_v62, %v1540_v2 }
 0x676   :  { %2685 = vtanh.f32 %v3343_v5 }
 0x680   :  { %v2686_v11 = vpop.eup %2685 }
 0x681   :  { %v1544_v24 = vmul.f32 %v2686_v11, %v2684_v8 }
 0x683   :  { %1546 = vst [vmem:[#allocation12 + $0x28] sm:$0xff] %v1544_v24  ;;  %1619 = vmatmul.mubr.f32.vlgmr.msra.gmra.mrb[12].mxu0 %v1544_v24  ;;  %1690 = vmatmul.mubr.f32.vlgmr.msra.gmra.mrb[12].mxu1 %v1544_v24 }
 0x684   :  { %2457 = vmatpush1.bf16.msra.mxu0 %v2959_v35  ;;  %2489 = vmatpush1.bf16.msra.mxu1 %v2962_v38 }
 0x685   :  { %2459 = vmatprep.subr.bf16.mxu0 %v2965_v42  ;;  %2491 = vmatprep.subr.bf16.mxu1 %v2968_v47 }
 0x686   :  { %1797 = vmatprep.mubr.f32.mxu0 %v2869_v7  ;;  %1868 = vmatprep.mubr.f32.mxu1 %v2869_v7 }
 0x688   :  { %2461 = vmatpush1.bf16.msra.mxu0 %v2972_v50  ;;  %2493 = vmatpush1.bf16.msra.mxu1 %v2976_v54 }
 0x689   :  { %2463 = vmatprep.subr.bf16.mxu0 %v2980_v57  ;;  %2495 = vmatprep.subr.bf16.mxu1 %v2984_v60 }
 0x68c   :  { %2465 = vmatpush1.bf16.msra.mxu0 %v2988_v0  ;;  %2497 = vmatpush1.bf16.msra.mxu1 %v2992_v3 }
 0x68d   :  { %2467 = vmatprep.subr.bf16.mxu0 %v2996_v6  ;;  %2499 = vmatprep.subr.bf16.mxu1 %v3000_v10 }
 0x690   :  { %2469 = vmatpush1.bf16.msra.mxu0 %v3004_v14  ;;  %2501 = vmatpush1.bf16.msra.mxu1 %v3008_v17 }
 0x691   :  { %2471 = vmatprep.subr.bf16.mxu0 %v3012_v20  ;;  %2503 = vmatprep.subr.bf16.mxu1 %v3016_v23 }
 0x694   :  { %2473 = vmatpush1.bf16.msra.mxu0 %v3020_v27  ;;  %2505 = vmatpush1.bf16.msra.mxu1 %v3024_v32 }
 0x695   :  { %2475 = vmatprep.subr.bf16.mxu0 %v3028_v36  ;;  %2507 = vmatprep.subr.bf16.mxu1 %v3032_v40 }
 0x698   :  { %2477 = vmatpush1.bf16.msra.mxu0 %v3036_v45  ;;  %2509 = vmatpush1.bf16.msra.mxu1 %v3040_v49 }
 0x699   :  { %2479 = vmatprep.subr.bf16.mxu0 %v3044_v53  ;;  %2511 = vmatprep.subr.bf16.mxu1 %v3048_v58 }
 0x69c   :  { %2481 = vmatpush1.bf16.msra.mxu0 %v3052_v63  ;;  %2513 = vmatpush1.bf16.msra.mxu1 %v3056_v4 }
 0x69d   :  { %2483 = vmatprep.subr.bf16.mxu0 %v3060_v9  ;;  %2515 = vmatprep.subr.bf16.mxu1 %v3064_v13 }
 0x6a0   :  { %2485 = vmatpush1.bf16.msra.mxu0 %v3068_v16  ;;  %2517 = vmatpush1.bf16.msra.mxu1 %v3072_v18 }
 0x756   :  { %v1620_v7 = vpop.f32.mrb[12].mxu0  ;;  %v1691_v35 = vpop.f32.mrb[12].mxu1 }
 0x757   :  { %v2530_v38 = vadd.f32 %v1620_v7, %v3121_v26  ;;  %v1622_v42 = vpop.f32.mrb[13].mxu0  ;;  %v1693_v47 = vpop.f32.mrb[13].mxu1  ;;  %v2546_v3 = vadd.f32 %v1691_v35, %v3130_v55 }
 0x758   :  { %v2531_v50 = vadd.f32 %v1622_v42, %v3123_v28  ;;  %v2547_v60 = vadd.f32 %v1693_v47, %v3127_v48 }
 0x759   :  { %v1984_v54 = vmul.f32 -1.442695, %v2530_v38 }
 0x75a   :  { %v1985_v57 = vmul.f32 -1.442695, %v2531_v50  ;;  %v1986_v0 = vmul.f32 -1.442695, %v2547_v60 }
 0x75b   :  { %2687 = vpow2.f32 %v1984_v54 }
 0x75c   :  { %2689 = vpow2.f32 %v1985_v57 }
 0x75d   :  { %2691 = vpow2.f32 %v1986_v0 }
 0x75e   :  { %2693 = vtanh.f32 %v2546_v3 }
 0x765   :  { %v2688_v6 = vpop.eup %2687 }
 0x766   :  { %v2690_v10 = vpop.eup %2689  ;;  %v1706_v14 = vadd.f32 1.0, %v2688_v6 }
 0x767   :  { %v1707_v17 = vadd.f32 1.0, %v2690_v10  ;;  %v2692_v20 = vpop.eup %2691 }
 0x768   :  { %2695 = vrcp.f32 %v1706_v14  ;;  %v2694_v23 = vpop.eup %2693  ;;  %v1716_v40 = vadd.f32 1.0, %v2692_v20 }
 0x769   :  { %2697 = vrcp.f32 %v1707_v17 }
 0x76a   :  { %2699 = vrcp.f32 %v1716_v40 }
 0x772   :  { %v2696_v27 = vpop.eup %2695 }
 0x773   :  { %v2698_v32 = vpop.eup %2697  ;;  %v1720_v36 = vmul.f32 %v2696_v27, %v2694_v23 }
 0x774   :  { %v1719_v45 = vmul.f32 %v2698_v32, %v3343_v5  ;;  %v2700_v53 = vpop.eup %2699 }
 0x776   :  { %v1721_v49 = vadd.f32 %v1720_v36, %v1719_v45 }
 0x778   :  { %2701 = vtanh.f32 %v1721_v49 }
 0x782   :  { %v2702_v58 = vpop.eup %2701 }
 0x783   :  { %v1723_v63 = vmul.f32 %v2702_v58, %v2700_v53 }
 0x785   :  { %1725 = vst [vmem:[#allocation12 + $0x30] sm:$0xff] %v1723_v63  ;;  %1798 = vmatmul.mubr.f32.vlgmr.msra.gmra.mrb[14].mxu0 %v1723_v63  ;;  %1869 = vmatmul.mubr.f32.vlgmr.msra.gmra.mrb[14].mxu1 %v1723_v63 }
 0x858   :  { %v1799_v4 = vpop.f32.mrb[14].mxu0  ;;  %v1870_v9 = vpop.f32.mrb[14].mxu1 }
 0x859   :  { %v2532_v13 = vadd.f32 %v1799_v4, %v3121_v26  ;;  %v1801_v16 = vpop.f32.mrb[15].mxu0  ;;  %v1872_v18 = vpop.f32.mrb[15].mxu1  ;;  %v2548_v21 = vadd.f32 %v1870_v9, %v3130_v55 }
 0x85a   :  { %v2533_v12 = vadd.f32 %v1801_v16, %v3123_v28  ;;  %v2549_v15 = vadd.f32 %v1872_v18, %v3127_v48 }
 0x85b   :  { %v1987_v25 = vmul.f32 -1.442695, %v2532_v13 }
 0x85c   :  { %v1988_v31 = vmul.f32 -1.442695, %v2533_v12  ;;  %v1989_v19 = vmul.f32 -1.442695, %v2549_v15 }
 0x85d   :  { %2703 = vpow2.f32 %v1987_v25 }
 0x85e   :  { %2705 = vpow2.f32 %v1988_v31 }
 0x85f   :  { %2707 = vpow2.f32 %v1989_v19 }
 0x860   :  { %2709 = vtanh.f32 %v2548_v21 }
 0x867   :  { %v2704_v22 = vpop.eup %2703 }
 0x868   :  { %v2706_v33 = vpop.eup %2705  ;;  %v1885_v34 = vadd.f32 1.0, %v2704_v22 }
 0x869   :  { %v1886_v37 = vadd.f32 1.0, %v2706_v33  ;;  %v2708_v26 = vpop.eup %2707 }
 0x86a   :  { %2711 = vrcp.f32 %v1885_v34  ;;  %v2710_v39 = vpop.eup %2709  ;;  %v1895_v44 = vadd.f32 1.0, %v2708_v26 }
 0x86b   :  { %2713 = vrcp.f32 %v1886_v37 }
 0x86c   :  { %2715 = vrcp.f32 %v1895_v44 }
 0x874   :  { %v2712_v28 = vpop.eup %2711 }
 0x875   :  { %v2714_v41 = vpop.eup %2713  ;;  %v1899_v43 = vmul.f32 %v2712_v28, %v2710_v39 }
 0x876   :  { %v1898_v48 = vmul.f32 %v2714_v41, %v1721_v49 }
 0x878   :  { %v1900_v29 = vadd.f32 %v1899_v43, %v1898_v48 }
 0x87a   :  { %2717 = vtanh.f32 %v1900_v29  ;;  %1910 = vst [vmem:[#allocation13] sm:$0xff] %v1900_v29 }
 0x87b   :  { %2818 = shalt.err (!%p2815_p8)
}
 0x87c   :  { %s2819_s20 = scalar_lea.hbm %s3419_s5, 128 }
 0x87d   :  { %p2820_p9 = scmp.ne.s32.totalorder %s3419_s5, %s2819_s20  ;;  %p2823_p10 = scmp.lt.u32.totalorder %s2819_s20, %s3419_s5 }
 0x87f   :  { %p2825_p11 = pnand %p2823_p10, %p2820_p9 }
 0x881   :  { %2828 = shalt.err (!%p2825_p11)
}
 0x882   :  { %1932 = dma.vmem_to_hbm [thread:$0]  %s1930_s0, 128, %s3419_s5, [#allocation14]   ;;  %v2716_v55 = vpop.eup %2715 }
 0x883   :  { %s2871_s1 = smov [#allocation12]  }
 0x884   :  { %s1916_s27 = sshll.u32 %s2871_s1, 4  ;;  %v2718_v46 = vpop.eup %2717  ;;  %s1917_s27 = int_to_ptr.vmem [resolvable:$true] %s1916_s27 }
 0x885   :  { %v1902_v30 = vmul.f32 %v2718_v46, %v2716_v55  ;;  %s2829_s30 = scalar_lea.vmem %s1917_s27, 1024  ;;  %p2834_p13 = scmp.lt.s32.totalorder %s1917_s27, %s1917_s27 }
 0x886   :  { %p2830_p12 = scmp.ne.s32.totalorder %s1917_s27, %s2829_s30  ;;  %p2835_p0 = scmp.lt.s32.totalorder %s2829_s30, %s2829_s30 }
 0x887   :  { %1904 = vst [vmem:[#allocation12 + $0x38] sm:$0xff] %v1902_v30 }
 0x888   :  { %p2836_p1 = por %p2835_p0, %p2834_p13 }
 0x88a   :  { %p2837_p2 = pnand %p2836_p1, %p2830_p12 }
 0x88c   :  { %2840 = shalt.err (!%p2837_p2)
}
 0x88d   :  { %s2841_s8 = scalar_lea.hbm %s3418_s4, 1024 }
 0x88e   :  { %p2842_p3 = scmp.ne.s32.totalorder %s3418_s4, %s2841_s8  ;;  %p2845_p4 = scmp.lt.u32.totalorder %s2841_s8, %s3418_s4 }
 0x890   :  { %p2847_p5 = pnand %p2845_p4, %p2842_p3 }
 0x892   :  { %2850 = shalt.err (!%p2847_p5)
}
 0x893   :  { %1922 = dma.vmem_to_hbm [thread:$0]  %s1917_s27, 1024, %s3418_s4, [#allocation9], %s2864_s28, %s2864_s28, %s2865_s29  }
 0x894   :  { %2859 = dma.done.wait [#allocation9], 1024  }
 0x895   :  { %2860 = vsyncadd [#allocation9], 4294966272 }
 0x896   :  { %2861 = dma.done.wait [#allocation14], 128  }
 0x897   :  { %2862 = vsyncadd [#allocation14], 4294967168 }
 0x898   :  { %1939 = vsyncpa [#allocation8], 1 }
 0x899   :  { %1940 = vsyncpa [#allocation11], 1 }
 0x89a   :  { %1941 = vsyncpa [#allocation9], 1 }
 0x89b   :  { %1942 = vsyncpa [#allocation14], 1 }

</bundles_post_ra>
